<compile_context>
chip_gen: v5e
topology: v5e:2x2
jax: 0.10.0
libtpu: 0.0.40
codegen_flags: <defaults>
</compile_context>

<pallas_src>
import jax
import jax.numpy as jnp
import numpy as np
from jax.experimental import pallas as pl
from jax.experimental.pallas import tpu as pltpu

BN_EPS = 1e-5
NEG_SLOPE = 0.1
VMEM_LIMIT_BYTES = 48 * 1024 * 1024   # explicit scoped-VMEM cap; safe on v5e/v6e/v7x


def _full_spec(shape):
    nd = len(shape)
    return pl.BlockSpec(shape, lambda *_: (0,) * nd)


# ---------------------------------------------------------------------------
# Kernel 1: fused 3-layer MixHop (powers [0,1,2]) + BatchNorm1d + LeakyReLU(0.1)
#   layer(h) = leaky( BN( [h | A h | A^2 h] @ W_blockdiag ) )
#   (MixHopConv bias is zeros-initialized -> omitted; BN would cancel it anyway.)
# ---------------------------------------------------------------------------
def mixhop_gcn_kernel(adj_ref, x_ref,
                      w1_ref, g1_ref, b1_ref,
                      w2_ref, g2_ref, b2_ref,
                      w3_ref, g3_ref, b3_ref,
                      out_ref):
    adj = adj_ref[...]                 # (N, N) bf16, resident across all 3 layers

    def layer(h, w_ref, g_ref, b_ref):
        fin = h.shape[1]
        # Two-hop propagation on the MXU: bf16 operands, f32 accumulation.
        x1 = jnp.dot(adj, h.astype(jnp.bfloat16), preferred_element_type=jnp.float32)
        x2 = jnp.dot(adj, x1.astype(jnp.bfloat16), preferred_element_type=jnp.float32)
        # Fused block-diagonal projection, expressed as K-block accumulation:
        # equivalent to concat([h, x1, x2], -1) @ W_bd, but avoids an in-kernel
        # lane concat; result is a single lane-dense (N, 3*Fout) slab.
        z = (jnp.dot(h,  w_ref[0 * fin:1 * fin, :], preferred_element_type=jnp.float32)
             + jnp.dot(x1, w_ref[1 * fin:2 * fin, :], preferred_element_type=jnp.float32)
             + jnp.dot(x2, w_ref[2 * fin:3 * fin, :], preferred_element_type=jnp.float32))
        # BatchNorm1d (training mode, biased batch variance) over the node axis; f32 VPU.
        mean = jnp.mean(z, axis=0, keepdims=True)
        var = jnp.mean((z - mean) ** 2, axis=0, keepdims=True)
        z = (z - mean) * jax.lax.rsqrt(var + BN_EPS)
        z = z * g_ref[...] + b_ref[...]
        return jnp.where(z > 0, z, NEG_SLOPE * z)        # LeakyReLU(0.1)

    h = layer(x_ref[...], w1_ref, g1_ref, b1_ref)
    h = layer(h, w2_ref, g2_ref, b2_ref)
    h = layer(h, w3_ref, g3_ref, b3_ref)
    out_ref[...] = h                                     # single full-width store


def mixhop_gcn(adj_bf16, x, fused_layers):
    n = x.shape[0]
    out_dim = fused_layers[2][0].shape[1]                # 3 * embedding_dim
    args = [adj_bf16, x]
    for (w, g, b) in fused_layers:
        args.extend([w, g, b])
    return pl.pallas_call(
        mixhop_gcn_kernel,
        out_shape=jax.ShapeDtypeStruct((n, out_dim), jnp.float32),
        grid=(1,),
        in_specs=[_full_spec(a.shape) for a in args],
        out_specs=_full_spec((n, out_dim)),
        compiler_params=pltpu.CompilerParams(
            dimension_semantics=("arbitrary",),
            vmem_limit_bytes=VMEM_LIMIT_BYTES),
    )(*args)


# ---------------------------------------------------------------------------
# Kernel 2: bilinear pair scoring  ypred[i] = a_i @ P1 @ P2 @ P1^T @ b_i
#   computed as  sum_D ( (a_i P1 P2) * (b_i P1) )  -> no transposed P1 copy,
#   reduction over D instead of 3E.  Tiled over pairs, "parallel" grid axis.
# ---------------------------------------------------------------------------
def score_kernel(a_ref, b_ref, p1_ref, p2_ref, out_ref):
    u = jnp.dot(a_ref[...], p1_ref[...], preferred_element_type=jnp.float32)   # a @ P1
    v = jnp.dot(b_ref[...], p1_ref[...], preferred_element_type=jnp.float32)   # b @ P1
    w = jnp.dot(u, p2_ref[...], preferred_element_type=jnp.float32)            # a @ P1 @ P2
    out_ref[...] = jnp.sum(w * v, axis=-1, keepdims=True)


def score_pairs(a_emb, b_emb, p1, p2, tile_b=8):
    bsz, fe = a_emb.shape
    d = p1.shape[1]
    padded = pl.cdiv(bsz, tile_b) * tile_b
    if padded != bsz:                                    # pad to a sublane-aligned tile
        pad = ((0, padded - bsz), (0, 0))
        a_emb = jnp.pad(a_emb, pad)
        b_emb = jnp.pad(b_emb, pad)
    out = pl.pallas_call(
        score_kernel,
        out_shape=jax.ShapeDtypeStruct((padded, 1), jnp.float32),
        grid=(padded // tile_b,),
        in_specs=[pl.BlockSpec((tile_b, fe), lambda i: (i, 0)),
                  pl.BlockSpec((tile_b, fe), lambda i: (i, 0)),
                  pl.BlockSpec((fe, d), lambda i: (0, 0)),
                  pl.BlockSpec((d, d), lambda i: (0, 0))],
        out_specs=pl.BlockSpec((tile_b, 1), lambda i: (i, 0)),
        compiler_params=pltpu.CompilerParams(
            dimension_semantics=("parallel",),
            vmem_limit_bytes=VMEM_LIMIT_BYTES),
    )(a_emb, b_emb, p1, p2)
    return out[:bsz]


# ---------------------------------------------------------------------------
# Glue: dense gcn_norm adjacency (A + I, symmetric D^{-1/2} normalization),
# block-diagonal fused projection weights.
# ---------------------------------------------------------------------------
def gcn_norm_dense(edge_index, num_nodes):
    src, dst = edge_index[0], edge_index[1]
    a = jnp.zeros((num_nodes, num_nodes), jnp.float32).at[dst, src].add(1.0)
    a_hat = a + jnp.eye(num_nodes, dtype=jnp.float32)
    deg = a_hat.sum(axis=1)
    dinv = jnp.where(deg > 0, jax.lax.rsqrt(deg), 0.0)
    return dinv[:, None] * a_hat * dinv[None, :]


def block_diag3(w0, w1, w2):
    fin, fout = w0.shape
    z = jnp.zeros((fin, fout), jnp.float32)
    return jnp.concatenate([
        jnp.concatenate([w0, z, z], axis=1),
        jnp.concatenate([z, w1, z], axis=1),
        jnp.concatenate([z, z, w2], axis=1)], axis=0)


# ---------------------------------------------------------------------------
# Full MixhopDecoder forward
# ---------------------------------------------------------------------------
def mixhop_decoder_forward(params, x, edge_index, drug_index):
    n = x.shape[0]
    adj = gcn_norm_dense(edge_index, n).astype(jnp.bfloat16)   # bf16 for MXU / HBM bytes

    fused = [
        (block_diag3(*params["conv_first"]), params["bn_first_gamma"], params["bn_first_beta"]),
        (block_diag3(*params["conv_block"]), params["bn_block_gamma"], params["bn_block_beta"]),
        (block_diag3(*params["conv_last"]),  params["bn_last_gamma"],  params["bn_last_beta"]),
    ]
    h = mixhop_gcn(adj, x, fused)

    pairs = drug_index.reshape(-1, 2)
    a_emb = h[pairs[:, 0] - 1]          # 1-indexed in the reference module
    b_emb = h[pairs[:, 1] - 1]
    return score_pairs(a_emb, b_emb, params["parameter1"], params["parameter2"])


# ---------------------------------------------------------------------------
# Pure-JAX reference (mirrors the PyTorch semantics and the bf16 propagation
# precision choice) for correctness check.
# ---------------------------------------------------------------------------
def reference_forward(params, x, edge_index, drug_index):
    adj = gcn_norm_dense(edge_index, x.shape[0]).astype(jnp.bfloat16)

    def layer(h, ws, gamma, beta):
        x1 = jnp.dot(adj, h.astype(jnp.bfloat16), preferred_element_type=jnp.float32)
        x2 = jnp.dot(adj, x1.astype(jnp.bfloat16), preferred_element_type=jnp.float32)
        out = jnp.concatenate([h @ ws[0], x1 @ ws[1], x2 @ ws[2]], axis=-1)
        mean = out.mean(0, keepdims=True)
        var = ((out - mean) ** 2).mean(0, keepdims=True)
        out = (out - mean) / jnp.sqrt(var + BN_EPS) * gamma + beta
        return jnp.where(out > 0, out, NEG_SLOPE * out)

    h = layer(x, params["conv_first"], params["bn_first_gamma"], params["bn_first_beta"])
    h = layer(h, params["conv_block"], params["bn_block_gamma"], params["bn_block_beta"])
    h = layer(h, params["conv_last"], params["bn_last_gamma"], params["bn_last_beta"])

    pairs = drug_index.reshape(-1, 2)
    a_emb = h[pairs[:, 0] - 1]
    b_emb = h[pairs[:, 1] - 1]
    p1, p2 = params["parameter1"], params["parameter2"]
    t = a_emb @ p1 @ p2 @ p1.T
    return jnp.sum(t * b_emb, axis=-1, keepdims=True)


# ---------------------------------------------------------------------------
def init_params(key, input_dim, hidden_dim, embedding_dim, decoder_dim):
    ks = jax.random.split(key, 16)
    k = iter(ks)

    def lin3(fin, fout):
        # three Linear(fin, fout, bias=False) weights, stored as (fin, fout)
        return tuple(jax.random.normal(next(k), (fin, fout), jnp.float32) * 0.1
                     for _ in range(3))

    params = {
        "conv_first": lin3(input_dim, hidden_dim),
        "conv_block": lin3(hidden_dim * 3, hidden_dim),
        "conv_last": lin3(hidden_dim * 3, embedding_dim),
        # BatchNorm1d init: gamma=1, beta=0 (shapes (1, C) for the kernel)
        "bn_first_gamma": jnp.ones((1, hidden_dim * 3), jnp.float32),
        "bn_first_beta": jnp.zeros((1, hidden_dim * 3), jnp.float32),
        "bn_block_gamma": jnp.ones((1, hidden_dim * 3), jnp.float32),
        "bn_block_beta": jnp.zeros((1, hidden_dim * 3), jnp.float32),
        "bn_last_gamma": jnp.ones((1, embedding_dim * 3), jnp.float32),
        "bn_last_beta": jnp.zeros((1, embedding_dim * 3), jnp.float32),
        # decoder bilinear parameters (torch.randn)
        "parameter1": jax.random.normal(next(k), (embedding_dim * 3, decoder_dim),
                                        jnp.float32),
        "parameter2": jax.random.normal(next(k), (decoder_dim, decoder_dim),
                                        jnp.float32),
    }
    return params


if __name__ == "__main__":
    key = jax.random.PRNGKey(0)
    k_param, k_x, k_edge, k_pair = jax.random.split(key, 4)

    num_nodes = 64
    input_dim = 16
    hidden_dim = 16
    embedding_dim = 16
    decoder_dim = 32
    num_edges = 256
    batch_pairs = 8

    params = init_params(k_param, input_dim, hidden_dim, embedding_dim, decoder_dim)

    x = jax.random.normal(k_x, (num_nodes, input_dim), jnp.float32)
    edge_index = jax.random.randint(k_edge, (2, num_edges), 0, num_nodes,
                                    dtype=jnp.int32)
    # 1-indexed drug pairs, as in the reference forward (idx - 1)
    drug_index = jax.random.randint(k_pair, (batch_pairs, 2), 1, num_nodes + 1,
                                    dtype=jnp.int32)

    ypred = mixhop_decoder_forward(params, x, edge_index, drug_index)
    ypred = jax.block_until_ready(ypred)

    yref = reference_forward(params, x, edge_index, drug_index)
    np.testing.assert_allclose(np.asarray(ypred), np.asarray(yref),
                               rtol=2e-3, atol=2e-3)

    print("KERNEL_OK")
</pallas_src>

<mosaic_0001>
module attributes {stable_mosaic.version = 11 : i64} {
  func.func @mixhop_gcn_kernel(%arg0: i32, %arg1: memref<64x64xbf16, #tpu.memory_space<vmem>>, %arg2: memref<64x16xf32, #tpu.memory_space<vmem>>, %arg3: memref<48x48xf32, #tpu.memory_space<vmem>>, %arg4: memref<1x48xf32, #tpu.memory_space<vmem>>, %arg5: memref<1x48xf32, #tpu.memory_space<vmem>>, %arg6: memref<144x48xf32, #tpu.memory_space<vmem>>, %arg7: memref<1x48xf32, #tpu.memory_space<vmem>>, %arg8: memref<1x48xf32, #tpu.memory_space<vmem>>, %arg9: memref<144x48xf32, #tpu.memory_space<vmem>>, %arg10: memref<1x48xf32, #tpu.memory_space<vmem>>, %arg11: memref<1x48xf32, #tpu.memory_space<vmem>>, %arg12: memref<64x48xf32, #tpu.memory_space<vmem>>) attributes {dimension_semantics = [#tpu.dimension_semantics<arbitrary>], iteration_bounds = array<i64: 1>, scalar_prefetch = 0 : i64, scratch_operands = 0 : i64, tpu.core_type = #tpu.core_type<tc>, window_params = [{pipeline_mode = #tpu.pipeline_mode<synchronous>, transform_indices = @transform_0, window_bounds = array<i64: 64, 64>}, {pipeline_mode = #tpu.pipeline_mode<synchronous>, transform_indices = @transform_1, window_bounds = array<i64: 64, 16>}, {pipeline_mode = #tpu.pipeline_mode<synchronous>, transform_indices = @transform_2, window_bounds = array<i64: 48, 48>}, {pipeline_mode = #tpu.pipeline_mode<synchronous>, transform_indices = @transform_3, window_bounds = array<i64: 1, 48>}, {pipeline_mode = #tpu.pipeline_mode<synchronous>, transform_indices = @transform_4, window_bounds = array<i64: 1, 48>}, {pipeline_mode = #tpu.pipeline_mode<synchronous>, transform_indices = @transform_5, window_bounds = array<i64: 144, 48>}, {pipeline_mode = #tpu.pipeline_mode<synchronous>, transform_indices = @transform_6, window_bounds = array<i64: 1, 48>}, {pipeline_mode = #tpu.pipeline_mode<synchronous>, transform_indices = @transform_7, window_bounds = array<i64: 1, 48>}, {pipeline_mode = #tpu.pipeline_mode<synchronous>, transform_indices = @transform_8, window_bounds = array<i64: 144, 48>}, {pipeline_mode = #tpu.pipeline_mode<synchronous>, transform_indices = @transform_9, window_bounds = array<i64: 1, 48>}, {pipeline_mode = #tpu.pipeline_mode<synchronous>, transform_indices = @transform_10, window_bounds = array<i64: 1, 48>}, {pipeline_mode = #tpu.pipeline_mode<synchronous>, transform_indices = @transform_11, window_bounds = array<i64: 64, 48>}]} {
    %c0 = arith.constant 0 : index
    %c0_0 = arith.constant 0 : index
    %0 = vector.load %arg1[%c0, %c0_0] : memref<64x64xbf16, #tpu.memory_space<vmem>>, vector<64x64xbf16>
    %c0_1 = arith.constant 0 : index
    %c0_2 = arith.constant 0 : index
    %1 = vector.load %arg2[%c0_1, %c0_2] : memref<64x16xf32, #tpu.memory_space<vmem>>, vector<64x16xf32>
    %2 = arith.truncf %1 : vector<64x16xf32> to vector<64x16xbf16>
    %cst = arith.constant dense<0.000000e+00> : vector<64x16xf32>
    %3 = tpu.matmul %0, %2, %cst {dimension_numbers = #tpu.dot_dimension_numbers<[1], [0], [0], [1], [0, 0, 1, 1], [], []>} : vector<64x64xbf16>, vector<64x16xbf16>, vector<64x16xf32> -> vector<64x16xf32>
    %4 = arith.truncf %3 : vector<64x16xf32> to vector<64x16xbf16>
    %cst_3 = arith.constant dense<0.000000e+00> : vector<64x16xf32>
    %5 = tpu.matmul %0, %4, %cst_3 {dimension_numbers = #tpu.dot_dimension_numbers<[1], [0], [0], [1], [0, 0, 1, 1], [], []>} : vector<64x64xbf16>, vector<64x16xbf16>, vector<64x16xf32> -> vector<64x16xf32>
    %c0_4 = arith.constant 0 : index
    %c0_5 = arith.constant 0 : index
    %6 = vector.load %arg3[%c0_4, %c0_5] : memref<48x48xf32, #tpu.memory_space<vmem>>, vector<16x48xf32>
    %cst_6 = arith.constant dense<0.000000e+00> : vector<64x48xf32>
    %7 = tpu.matmul %1, %6, %cst_6 {dimension_numbers = #tpu.dot_dimension_numbers<[1], [0], [0], [1], [0, 0, 1, 1], [], []>} : vector<64x16xf32>, vector<16x48xf32>, vector<64x48xf32> -> vector<64x48xf32>
    %c16 = arith.constant 16 : index
    %c0_7 = arith.constant 0 : index
    %8 = vector.load %arg3[%c16, %c0_7] : memref<48x48xf32, #tpu.memory_space<vmem>>, vector<16x48xf32>
    %cst_8 = arith.constant dense<0.000000e+00> : vector<64x48xf32>
    %9 = tpu.matmul %3, %8, %cst_8 {dimension_numbers = #tpu.dot_dimension_numbers<[1], [0], [0], [1], [0, 0, 1, 1], [], []>} : vector<64x16xf32>, vector<16x48xf32>, vector<64x48xf32> -> vector<64x48xf32>
    %10 = arith.addf %7, %9 : vector<64x48xf32>
    %c32 = arith.constant 32 : index
    %c0_9 = arith.constant 0 : index
    %11 = vector.load %arg3[%c32, %c0_9] : memref<48x48xf32, #tpu.memory_space<vmem>>, vector<16x48xf32>
    %cst_10 = arith.constant dense<0.000000e+00> : vector<64x48xf32>
    %12 = tpu.matmul %5, %11, %cst_10 {dimension_numbers = #tpu.dot_dimension_numbers<[1], [0], [0], [1], [0, 0, 1, 1], [], []>} : vector<64x16xf32>, vector<16x48xf32>, vector<64x48xf32> -> vector<64x48xf32>
    %13 = arith.addf %10, %12 : vector<64x48xf32>
    %cst_11 = arith.constant dense<0.000000e+00> : vector<48xf32>
    %14 = vector.multi_reduction <add>, %13, %cst_11 [0] : vector<64x48xf32> to vector<48xf32>
    %15 = vector.shape_cast %14 : vector<48xf32> to vector<1x48xf32>
    %cst_12 = arith.constant 6.400000e+01 : f32
    %16 = vector.broadcast %cst_12 : f32 to vector<1x48xf32>
    %17 = arith.divf %15, %16 : vector<1x48xf32>
    %18 = vector.broadcast %17 : vector<1x48xf32> to vector<64x48xf32>
    %19 = arith.subf %13, %18 : vector<64x48xf32>
    %20 = arith.mulf %19, %19 : vector<64x48xf32>
    %cst_13 = arith.constant dense<0.000000e+00> : vector<48xf32>
    %21 = vector.multi_reduction <add>, %20, %cst_13 [0] : vector<64x48xf32> to vector<48xf32>
    %22 = vector.shape_cast %21 : vector<48xf32> to vector<1x48xf32>
    %cst_14 = arith.constant 6.400000e+01 : f32
    %23 = vector.broadcast %cst_14 : f32 to vector<1x48xf32>
    %24 = arith.divf %22, %23 : vector<1x48xf32>
    %25 = vector.broadcast %17 : vector<1x48xf32> to vector<64x48xf32>
    %26 = arith.subf %13, %25 : vector<64x48xf32>
    %cst_15 = arith.constant 9.99999974E-6 : f32
    %27 = vector.broadcast %cst_15 : f32 to vector<1x48xf32>
    %28 = arith.addf %24, %27 : vector<1x48xf32>
    %29 = math.rsqrt %28 : vector<1x48xf32>
    %30 = vector.broadcast %29 : vector<1x48xf32> to vector<64x48xf32>
    %31 = arith.mulf %26, %30 : vector<64x48xf32>
    %c0_16 = arith.constant 0 : index
    %c0_17 = arith.constant 0 : index
    %32 = vector.load %arg4[%c0_16, %c0_17] : memref<1x48xf32, #tpu.memory_space<vmem>>, vector<1x48xf32>
    %33 = vector.broadcast %32 : vector<1x48xf32> to vector<64x48xf32>
    %34 = arith.mulf %31, %33 : vector<64x48xf32>
    %c0_18 = arith.constant 0 : index
    %c0_19 = arith.constant 0 : index
    %35 = vector.load %arg5[%c0_18, %c0_19] : memref<1x48xf32, #tpu.memory_space<vmem>>, vector<1x48xf32>
    %36 = vector.broadcast %35 : vector<1x48xf32> to vector<64x48xf32>
    %37 = arith.addf %34, %36 : vector<64x48xf32>
    %cst_20 = arith.constant 0.000000e+00 : f32
    %38 = vector.broadcast %cst_20 : f32 to vector<64x48xf32>
    %39 = arith.cmpf ogt, %37, %38 : vector<64x48xf32>
    %cst_21 = arith.constant 1.000000e-01 : f32
    %40 = vector.broadcast %cst_21 : f32 to vector<64x48xf32>
    %41 = arith.mulf %40, %37 : vector<64x48xf32>
    %42 = arith.select %39, %37, %41 : vector<64x48xi1>, vector<64x48xf32>
    %43 = arith.truncf %42 : vector<64x48xf32> to vector<64x48xbf16>
    %cst_22 = arith.constant dense<0.000000e+00> : vector<64x48xf32>
    %44 = tpu.matmul %0, %43, %cst_22 {dimension_numbers = #tpu.dot_dimension_numbers<[1], [0], [0], [1], [0, 0, 1, 1], [], []>} : vector<64x64xbf16>, vector<64x48xbf16>, vector<64x48xf32> -> vector<64x48xf32>
    %45 = arith.truncf %44 : vector<64x48xf32> to vector<64x48xbf16>
    %cst_23 = arith.constant dense<0.000000e+00> : vector<64x48xf32>
    %46 = tpu.matmul %0, %45, %cst_23 {dimension_numbers = #tpu.dot_dimension_numbers<[1], [0], [0], [1], [0, 0, 1, 1], [], []>} : vector<64x64xbf16>, vector<64x48xbf16>, vector<64x48xf32> -> vector<64x48xf32>
    %c0_24 = arith.constant 0 : index
    %c0_25 = arith.constant 0 : index
    %47 = vector.load %arg6[%c0_24, %c0_25] : memref<144x48xf32, #tpu.memory_space<vmem>>, vector<48x48xf32>
    %cst_26 = arith.constant dense<0.000000e+00> : vector<64x48xf32>
    %48 = tpu.matmul %42, %47, %cst_26 {dimension_numbers = #tpu.dot_dimension_numbers<[1], [0], [0], [1], [0, 0, 1, 1], [], []>} : vector<64x48xf32>, vector<48x48xf32>, vector<64x48xf32> -> vector<64x48xf32>
    %c48 = arith.constant 48 : index
    %c0_27 = arith.constant 0 : index
    %49 = vector.load %arg6[%c48, %c0_27] : memref<144x48xf32, #tpu.memory_space<vmem>>, vector<48x48xf32>
    %cst_28 = arith.constant dense<0.000000e+00> : vector<64x48xf32>
    %50 = tpu.matmul %44, %49, %cst_28 {dimension_numbers = #tpu.dot_dimension_numbers<[1], [0], [0], [1], [0, 0, 1, 1], [], []>} : vector<64x48xf32>, vector<48x48xf32>, vector<64x48xf32> -> vector<64x48xf32>
    %51 = arith.addf %48, %50 : vector<64x48xf32>
    %c96 = arith.constant 96 : index
    %c0_29 = arith.constant 0 : index
    %52 = vector.load %arg6[%c96, %c0_29] : memref<144x48xf32, #tpu.memory_space<vmem>>, vector<48x48xf32>
    %cst_30 = arith.constant dense<0.000000e+00> : vector<64x48xf32>
    %53 = tpu.matmul %46, %52, %cst_30 {dimension_numbers = #tpu.dot_dimension_numbers<[1], [0], [0], [1], [0, 0, 1, 1], [], []>} : vector<64x48xf32>, vector<48x48xf32>, vector<64x48xf32> -> vector<64x48xf32>
    %54 = arith.addf %51, %53 : vector<64x48xf32>
    %cst_31 = arith.constant dense<0.000000e+00> : vector<48xf32>
    %55 = vector.multi_reduction <add>, %54, %cst_31 [0] : vector<64x48xf32> to vector<48xf32>
    %56 = vector.shape_cast %55 : vector<48xf32> to vector<1x48xf32>
    %cst_32 = arith.constant 6.400000e+01 : f32
    %57 = vector.broadcast %cst_32 : f32 to vector<1x48xf32>
    %58 = arith.divf %56, %57 : vector<1x48xf32>
    %59 = vector.broadcast %58 : vector<1x48xf32> to vector<64x48xf32>
    %60 = arith.subf %54, %59 : vector<64x48xf32>
    %61 = arith.mulf %60, %60 : vector<64x48xf32>
    %cst_33 = arith.constant dense<0.000000e+00> : vector<48xf32>
    %62 = vector.multi_reduction <add>, %61, %cst_33 [0] : vector<64x48xf32> to vector<48xf32>
    %63 = vector.shape_cast %62 : vector<48xf32> to vector<1x48xf32>
    %cst_34 = arith.constant 6.400000e+01 : f32
    %64 = vector.broadcast %cst_34 : f32 to vector<1x48xf32>
    %65 = arith.divf %63, %64 : vector<1x48xf32>
    %66 = vector.broadcast %58 : vector<1x48xf32> to vector<64x48xf32>
    %67 = arith.subf %54, %66 : vector<64x48xf32>
    %cst_35 = arith.constant 9.99999974E-6 : f32
    %68 = vector.broadcast %cst_35 : f32 to vector<1x48xf32>
    %69 = arith.addf %65, %68 : vector<1x48xf32>
    %70 = math.rsqrt %69 : vector<1x48xf32>
    %71 = vector.broadcast %70 : vector<1x48xf32> to vector<64x48xf32>
    %72 = arith.mulf %67, %71 : vector<64x48xf32>
    %c0_36 = arith.constant 0 : index
    %c0_37 = arith.constant 0 : index
    %73 = vector.load %arg7[%c0_36, %c0_37] : memref<1x48xf32, #tpu.memory_space<vmem>>, vector<1x48xf32>
    %74 = vector.broadcast %73 : vector<1x48xf32> to vector<64x48xf32>
    %75 = arith.mulf %72, %74 : vector<64x48xf32>
    %c0_38 = arith.constant 0 : index
    %c0_39 = arith.constant 0 : index
    %76 = vector.load %arg8[%c0_38, %c0_39] : memref<1x48xf32, #tpu.memory_space<vmem>>, vector<1x48xf32>
    %77 = vector.broadcast %76 : vector<1x48xf32> to vector<64x48xf32>
    %78 = arith.addf %75, %77 : vector<64x48xf32>
    %cst_40 = arith.constant 0.000000e+00 : f32
    %79 = vector.broadcast %cst_40 : f32 to vector<64x48xf32>
    %80 = arith.cmpf ogt, %78, %79 : vector<64x48xf32>
    %cst_41 = arith.constant 1.000000e-01 : f32
    %81 = vector.broadcast %cst_41 : f32 to vector<64x48xf32>
    %82 = arith.mulf %81, %78 : vector<64x48xf32>
    %83 = arith.select %80, %78, %82 : vector<64x48xi1>, vector<64x48xf32>
    %84 = arith.truncf %83 : vector<64x48xf32> to vector<64x48xbf16>
    %cst_42 = arith.constant dense<0.000000e+00> : vector<64x48xf32>
    %85 = tpu.matmul %0, %84, %cst_42 {dimension_numbers = #tpu.dot_dimension_numbers<[1], [0], [0], [1], [0, 0, 1, 1], [], []>} : vector<64x64xbf16>, vector<64x48xbf16>, vector<64x48xf32> -> vector<64x48xf32>
    %86 = arith.truncf %85 : vector<64x48xf32> to vector<64x48xbf16>
    %cst_43 = arith.constant dense<0.000000e+00> : vector<64x48xf32>
    %87 = tpu.matmul %0, %86, %cst_43 {dimension_numbers = #tpu.dot_dimension_numbers<[1], [0], [0], [1], [0, 0, 1, 1], [], []>} : vector<64x64xbf16>, vector<64x48xbf16>, vector<64x48xf32> -> vector<64x48xf32>
    %c0_44 = arith.constant 0 : index
    %c0_45 = arith.constant 0 : index
    %88 = vector.load %arg9[%c0_44, %c0_45] : memref<144x48xf32, #tpu.memory_space<vmem>>, vector<48x48xf32>
    %cst_46 = arith.constant dense<0.000000e+00> : vector<64x48xf32>
    %89 = tpu.matmul %83, %88, %cst_46 {dimension_numbers = #tpu.dot_dimension_numbers<[1], [0], [0], [1], [0, 0, 1, 1], [], []>} : vector<64x48xf32>, vector<48x48xf32>, vector<64x48xf32> -> vector<64x48xf32>
    %c48_47 = arith.constant 48 : index
    %c0_48 = arith.constant 0 : index
    %90 = vector.load %arg9[%c48_47, %c0_48] : memref<144x48xf32, #tpu.memory_space<vmem>>, vector<48x48xf32>
    %cst_49 = arith.constant dense<0.000000e+00> : vector<64x48xf32>
    %91 = tpu.matmul %85, %90, %cst_49 {dimension_numbers = #tpu.dot_dimension_numbers<[1], [0], [0], [1], [0, 0, 1, 1], [], []>} : vector<64x48xf32>, vector<48x48xf32>, vector<64x48xf32> -> vector<64x48xf32>
    %92 = arith.addf %89, %91 : vector<64x48xf32>
    %c96_50 = arith.constant 96 : index
    %c0_51 = arith.constant 0 : index
    %93 = vector.load %arg9[%c96_50, %c0_51] : memref<144x48xf32, #tpu.memory_space<vmem>>, vector<48x48xf32>
    %cst_52 = arith.constant dense<0.000000e+00> : vector<64x48xf32>
    %94 = tpu.matmul %87, %93, %cst_52 {dimension_numbers = #tpu.dot_dimension_numbers<[1], [0], [0], [1], [0, 0, 1, 1], [], []>} : vector<64x48xf32>, vector<48x48xf32>, vector<64x48xf32> -> vector<64x48xf32>
    %95 = arith.addf %92, %94 : vector<64x48xf32>
    %cst_53 = arith.constant dense<0.000000e+00> : vector<48xf32>
    %96 = vector.multi_reduction <add>, %95, %cst_53 [0] : vector<64x48xf32> to vector<48xf32>
    %97 = vector.shape_cast %96 : vector<48xf32> to vector<1x48xf32>
    %cst_54 = arith.constant 6.400000e+01 : f32
    %98 = vector.broadcast %cst_54 : f32 to vector<1x48xf32>
    %99 = arith.divf %97, %98 : vector<1x48xf32>
    %100 = vector.broadcast %99 : vector<1x48xf32> to vector<64x48xf32>
    %101 = arith.subf %95, %100 : vector<64x48xf32>
    %102 = arith.mulf %101, %101 : vector<64x48xf32>
    %cst_55 = arith.constant dense<0.000000e+00> : vector<48xf32>
    %103 = vector.multi_reduction <add>, %102, %cst_55 [0] : vector<64x48xf32> to vector<48xf32>
    %104 = vector.shape_cast %103 : vector<48xf32> to vector<1x48xf32>
    %cst_56 = arith.constant 6.400000e+01 : f32
    %105 = vector.broadcast %cst_56 : f32 to vector<1x48xf32>
    %106 = arith.divf %104, %105 : vector<1x48xf32>
    %107 = vector.broadcast %99 : vector<1x48xf32> to vector<64x48xf32>
    %108 = arith.subf %95, %107 : vector<64x48xf32>
    %cst_57 = arith.constant 9.99999974E-6 : f32
    %109 = vector.broadcast %cst_57 : f32 to vector<1x48xf32>
    %110 = arith.addf %106, %109 : vector<1x48xf32>
    %111 = math.rsqrt %110 : vector<1x48xf32>
    %112 = vector.broadcast %111 : vector<1x48xf32> to vector<64x48xf32>
    %113 = arith.mulf %108, %112 : vector<64x48xf32>
    %c0_58 = arith.constant 0 : index
    %c0_59 = arith.constant 0 : index
    %114 = vector.load %arg10[%c0_58, %c0_59] : memref<1x48xf32, #tpu.memory_space<vmem>>, vector<1x48xf32>
    %115 = vector.broadcast %114 : vector<1x48xf32> to vector<64x48xf32>
    %116 = arith.mulf %113, %115 : vector<64x48xf32>
    %c0_60 = arith.constant 0 : index
    %c0_61 = arith.constant 0 : index
    %117 = vector.load %arg11[%c0_60, %c0_61] : memref<1x48xf32, #tpu.memory_space<vmem>>, vector<1x48xf32>
    %118 = vector.broadcast %117 : vector<1x48xf32> to vector<64x48xf32>
    %119 = arith.addf %116, %118 : vector<64x48xf32>
    %cst_62 = arith.constant 0.000000e+00 : f32
    %120 = vector.broadcast %cst_62 : f32 to vector<64x48xf32>
    %121 = arith.cmpf ogt, %119, %120 : vector<64x48xf32>
    %cst_63 = arith.constant 1.000000e-01 : f32
    %122 = vector.broadcast %cst_63 : f32 to vector<64x48xf32>
    %123 = arith.mulf %122, %119 : vector<64x48xf32>
    %124 = arith.select %121, %119, %123 : vector<64x48xi1>, vector<64x48xf32>
    %c0_64 = arith.constant 0 : index
    %c0_65 = arith.constant 0 : index
    %125 = vector.load %arg12[%c0_64, %c0_65] : memref<64x48xf32, #tpu.memory_space<vmem>>, vector<64x48xf32>
    tpu.vector_store %arg12[%c0_64, %c0_65], %124 {strides = array<i32>} : memref<64x48xf32, #tpu.memory_space<vmem>>, vector<64x48xf32>,
    return
  }
  func.func @transform_0(%arg0: i32) -> (i32, i32) {
    %c0_i32 = arith.constant 0 : i32
    %c0_i32_0 = arith.constant 0 : i32
    %c0_i32_1 = arith.constant 0 : i32
    return %c0_i32, %c0_i32_0 : i32, i32
  }
  func.func @transform_1(%arg0: i32) -> (i32, i32) {
    %c0_i32 = arith.constant 0 : i32
    %c0_i32_0 = arith.constant 0 : i32
    %c0_i32_1 = arith.constant 0 : i32
    return %c0_i32, %c0_i32_0 : i32, i32
  }
  func.func @transform_2(%arg0: i32) -> (i32, i32) {
    %c0_i32 = arith.constant 0 : i32
    %c0_i32_0 = arith.constant 0 : i32
    %c0_i32_1 = arith.constant 0 : i32
    return %c0_i32, %c0_i32_0 : i32, i32
  }
  func.func @transform_3(%arg0: i32) -> (i32, i32) {
    %c0_i32 = arith.constant 0 : i32
    %c0_i32_0 = arith.constant 0 : i32
    %c0_i32_1 = arith.constant 0 : i32
    return %c0_i32, %c0_i32_0 : i32, i32
  }
  func.func @transform_4(%arg0: i32) -> (i32, i32) {
    %c0_i32 = arith.constant 0 : i32
    %c0_i32_0 = arith.constant 0 : i32
    %c0_i32_1 = arith.constant 0 : i32
    return %c0_i32, %c0_i32_0 : i32, i32
  }
  func.func @transform_5(%arg0: i32) -> (i32, i32) {
    %c0_i32 = arith.constant 0 : i32
    %c0_i32_0 = arith.constant 0 : i32
    %c0_i32_1 = arith.constant 0 : i32
    return %c0_i32, %c0_i32_0 : i32, i32
  }
  func.func @transform_6(%arg0: i32) -> (i32, i32) {
    %c0_i32 = arith.constant 0 : i32
    %c0_i32_0 = arith.constant 0 : i32
    %c0_i32_1 = arith.constant 0 : i32
    return %c0_i32, %c0_i32_0 : i32, i32
  }
  func.func @transform_7(%arg0: i32) -> (i32, i32) {
    %c0_i32 = arith.constant 0 : i32
    %c0_i32_0 = arith.constant 0 : i32
    %c0_i32_1 = arith.constant 0 : i32
    return %c0_i32, %c0_i32_0 : i32, i32
  }
  func.func @transform_8(%arg0: i32) -> (i32, i32) {
    %c0_i32 = arith.constant 0 : i32
    %c0_i32_0 = arith.constant 0 : i32
    %c0_i32_1 = arith.constant 0 : i32
    return %c0_i32, %c0_i32_0 : i32, i32
  }
  func.func @transform_9(%arg0: i32) -> (i32, i32) {
    %c0_i32 = arith.constant 0 : i32
    %c0_i32_0 = arith.constant 0 : i32
    %c0_i32_1 = arith.constant 0 : i32
    return %c0_i32, %c0_i32_0 : i32, i32
  }
  func.func @transform_10(%arg0: i32) -> (i32, i32) {
    %c0_i32 = arith.constant 0 : i32
    %c0_i32_0 = arith.constant 0 : i32
    %c0_i32_1 = arith.constant 0 : i32
    return %c0_i32, %c0_i32_0 : i32, i32
  }
  func.func @transform_11(%arg0: i32) -> (i32, i32) {
    %c0_i32 = arith.constant 0 : i32
    %c0_i32_0 = arith.constant 0 : i32
    %c0_i32_1 = arith.constant 0 : i32
    return %c0_i32, %c0_i32_0 : i32, i32
  }
}

</mosaic_0001>

<bundles_post_ra>
// kernel: tpu_custom_call.1
= control target key start
LH: loop header
LB: loop body
LE: loop exit
PB: predicated region body
PF: predicated region fallthrough
CT: control target
= control target key end

     0   :  { %vm79_vm0 = vcmask 523264   ;;  %vm158_vm1 = vcmask 130048   ;;  %vm364_vm2 = vcmask 392192   ;;  %s1992_s1 = inlined_call_operand.vmem [shape: f32[64,16], index: 1, kind: input, shape index: {}]   ;;  %s1993_s0 = inlined_call_operand.vmem [shape: bf16[64,64], index: 0, kind: input, shape index: {}]   ;;  %s1994_s2 = inlined_call_operand.vmem [shape: f32[48,48], index: 2, kind: input, shape index: {}]   ;;  %s1995_s3 = inlined_call_operand.vmem [shape: f32[1,48], index: 3, kind: input, shape index: {}]   ;;  %s1996_s4 = inlined_call_operand.vmem [shape: f32[1,48], index: 4, kind: input, shape index: {}]   ;;  %s1997_s5 = inlined_call_operand.vmem [shape: f32[144,48], index: 5, kind: input, shape index: {}]   ;;  %s1998_s6 = inlined_call_operand.vmem [shape: f32[1,48], index: 6, kind: input, shape index: {}]   ;;  %s1999_s7 = inlined_call_operand.vmem [shape: f32[1,48], index: 7, kind: input, shape index: {}]   ;;  %s2000_s8 = inlined_call_operand.vmem [shape: f32[144,48], index: 8, kind: input, shape index: {}]   ;;  %s2001_s9 = inlined_call_operand.vmem [shape: f32[1,48], index: 9, kind: input, shape index: {}]   ;;  %s2002_s10 = inlined_call_operand.vmem [shape: f32[1,48], index: 10, kind: input, shape index: {}]   ;;  %s2003_s11 = inlined_call_operand.vmem [shape: f32[64,48], index: 11, kind: output, shape index: {}]  }
   0x1   :  { %v53_v0 = vld [vmem:[%s1992_s1 + $0x30] sm:$0xff]  ;;  %v54_v1 = vld [vmem:[%s1992_s1 + $0x38] sm:$0xff]  ;;  %v51_v2 = vld [vmem:[%s1992_s1 + $0x20] sm:$0xff] }
   0x2   :  { %v58_v3 = vpack.c.bf16 %v54_v1, %v53_v0  ;;  %v52_v4 = vld [vmem:[%s1992_s1 + $0x28] sm:$0xff]  ;;  %v49_v6 = vld [vmem:[%s1992_s1 + $0x10] sm:$0xff]  ;;  %v50_v7 = vld [vmem:[%s1992_s1 + $0x18] sm:$0xff] }
   0x3   :  { %v57_v5 = vpack.c.bf16 %v52_v4, %v51_v2  ;;  %v56_v8 = vpack.c.bf16 %v50_v7, %v49_v6  ;;  %v47_v9 = vld [vmem:[%s1992_s1] sm:$0xff]  ;;  %v48_v10 = vld [vmem:[%s1992_s1 + $0x8] sm:$0xff]  ;;  %v157_v14 = vld [vmem:[%s1994_s2 + $0x18] sm:$0xff] }
   0x4   :  { %96 = vmatpush.bf16.msra.mxu0 %v58_v3  ;;  %1455 = vmatpush.bf16.msra.mxu1 %v58_v3  ;;  %v55_v11 = vpack.c.bf16 %v48_v10, %v47_v9  ;;  %v1566_v12 = vld [vmem:[%s1993_s0] sm:$0xff]  ;;  %v1571_v13 = vld [vmem:[%s1993_s0 + $0x8] sm:$0xff]  ;;  %v1586_v16 = vld [vmem:[%s1993_s0 + $0x10] sm:$0xff] }
   0x5   :  { %v155_v15 = vld [vmem:[%s1994_s2 + $0x8] sm:$0xff]  ;;  %197 = vmatpush.msra.mxu2 %v157_v14  ;;  %v1593_v17 = vld [vmem:[%s1993_s0 + $0x18] sm:$0xff]  ;;  %v156_v18 = vld [vmem:[%s1994_s2 + $0x10] sm:$0xff] }
   0x6   :  { %262 = vmatpush.msra.mxu3 %v155_v15  ;;  %v154_v19 = vld [vmem:[%s1994_s2] sm:$0xff]  ;;  %v290_v32 = vld [vmem:[%s1994_s2 + $0x28] sm:$0xff] }
   0x7   :  { %198 = vmatpush.msra.mxu2 %v156_v18  ;;  %v289_v33 = vld [vmem:[%s1994_s2 + $0x20] sm:$0xff] }
   0x8   :  { %97 = vmatpush.bf16.msra.mxu0 %v57_v5  ;;  %1456 = vmatpush.bf16.msra.mxu1 %v57_v5 }
   0x9   :  { %263 = vmatpush.msra.mxu3 %v154_v19  ;;  %329 = vmatpush.msrb.mxu2 %v290_v32 }
   0xa   :  { %1371 = vmatmul.msk.f32.vlgmr.msra.gmra.mxu3 %vm158_vm1, %v47_v9  ;;  %v1478_v9 = vmov 64.0  }
   0xb   :  { %330 = vmatpush.msrb.mxu2 %v289_v33  ;;  %1466 = vrcp.f32 %v1478_v9 }
   0xc   :  { %98 = vmatpush.bf16.msra.mxu0 %v56_v8  ;;  %1457 = vmatpush.bf16.msra.mxu1 %v56_v8 }
  0x10   :  { %99 = vmatpush.bf16.msra.mxu0 %v55_v11  ;;  %1458 = vmatpush.bf16.msra.mxu1 %v55_v11 }
  0x12   :  { %1372 = vmatmul.msk.f32.gmra.mxu3 %vm158_vm1, %v48_v10 }
  0x13   :  { %1355 = vmatmul.msk.bf16.vlgmr.msra.gmra.mxu0 %vm79_vm0, %v1566_v12  ;;  %1356 = vmatmul.msk.bf16.vlgmr.msra.gmra.mxu1 %vm79_vm0, %v1571_v13 }
  0x1a   :  { %1373 = vmatmul.msk.f32.gmra.mxu3 %vm158_vm1, %v49_v6 }
  0x22   :  { %1374 = vmatmul.msk.f32.gmra.mxu3 %vm158_vm1, %v50_v7 }
  0x23   :  { %1357 = vmatmul.msk.bf16.gmra.mxu1 %vm79_vm0, %v1586_v16 }
  0x2a   :  { %1375 = vmatmul.msk.f32.gmra.mxu3 %vm158_vm1, %v51_v2 }
  0x32   :  { %1376 = vmatmul.msk.f32.gmra.mxu3 %vm158_vm1, %v52_v4 }
  0x33   :  { %1358 = vmatmul.msk.bf16.gmra.mxu1 %vm79_vm0, %v1593_v17 }
  0x3a   :  { %1377 = vmatmul.msk.f32.gmra.mxu3 %vm158_vm1, %v53_v0 }
  0x42   :  { %1378 = vmatmul.msk.f32.gmra.mxu3 %vm158_vm1, %v54_v1 }
  0x8d   :  { %v265_v48 = vpop.f32.mrf.mxu3 }
  0x90   :  { %v101_v20 = vpop.f32.mrf.mxu0  ;;  %v106_v21 = vpop.f32.mrf.mxu1 }
  0x91   :  { %1363 = vmatmul.msk.f32.vlgmr.msra.gmra.mxu2 %vm158_vm1, %v101_v20 }
  0x95   :  { %v268_v50 = vpop.f32.mrf.mxu3 }
  0x98   :  { %v103_v22 = vpop.f32.mrf.mxu0  ;;  %v108_v23 = vpop.f32.mrf.mxu1 }
  0x99   :  { %1364 = vmatmul.msk.f32.gmra.mxu2 %vm158_vm1, %v103_v22  ;;  %v122_v30 = vpack.c.bf16 %v108_v23, %v106_v21  ;;  %v121_v31 = vpack.c.bf16 %v103_v22, %v101_v20 }
  0x9d   :  { %v271_v53 = vpop.f32.mrf.mxu3 }
  0xa0   :  { %v111_v24 = vpop.f32.mrf.mxu1 }
  0xa1   :  { %1365 = vmatmul.msk.f32.gmra.mxu2 %vm158_vm1, %v106_v21 }
  0xa5   :  { %v274_v55 = vpop.f32.mrf.mxu3 }
  0xa8   :  { %v113_v25 = vpop.f32.mrf.mxu1 }
  0xa9   :  { %1366 = vmatmul.msk.f32.gmra.mxu2 %vm158_vm1, %v108_v23  ;;  %v123_v29 = vpack.c.bf16 %v113_v25, %v111_v24 }
  0xad   :  { %v277_v57 = vpop.f32.mrf.mxu3 }
  0xb0   :  { %v116_v26 = vpop.f32.mrf.mxu1 }
  0xb1   :  { %1367 = vmatmul.msk.f32.gmra.mxu2 %vm158_vm1, %v111_v24 }
  0xb5   :  { %v280_v59 = vpop.f32.mrf.mxu3 }
  0xb8   :  { %v118_v27 = vpop.f32.mrf.mxu1 }
  0xb9   :  { %1368 = vmatmul.msk.f32.gmra.mxu2 %vm158_vm1, %v113_v25  ;;  %v124_v28 = vpack.c.bf16 %v118_v27, %v116_v26 }
  0xbb   :  { %129 = vmatpush.bf16.msrb.mxu1 %v124_v28 }
  0xbd   :  { %v283_v2 = vpop.f32.mrf.mxu3 }
  0xbf   :  { %130 = vmatpush.bf16.msrb.mxu1 %v123_v29 }
  0xc1   :  { %1369 = vmatmul.msk.f32.gmra.mxu2 %vm158_vm1, %v116_v26  ;;  %v1467_v26 = vpop.eup %1466 }
  0xc2   :  { %v387_v33 = vmul.f32 64.0, %v1467_v26  ;;  %vm391_vm3 = vweird.f32 %v1467_v26 }
  0xc3   :  { %131 = vmatpush.bf16.msrb.mxu1 %v122_v30 }
  0xc7   :  { %132 = vmatpush.bf16.msrb.mxu1 %v121_v31 }
  0xc9   :  { %1370 = vmatmul.msk.f32.gmra.mxu2 %vm158_vm1, %v118_v27  ;;  %v286_v27 = vpop.f32.mrf.mxu3 }
  0xca   :  { %1359 = vmatmul.msk.bf16.vlgmr.msrb.gmra.mxu1 %vm79_vm0, %v1566_v12 }
  0xda   :  { %1360 = vmatmul.msk.bf16.gmra.mxu1 %vm79_vm0, %v1571_v13 }
  0xea   :  { %1361 = vmatmul.msk.bf16.gmra.mxu1 %vm79_vm0, %v1586_v16 }
  0xfa   :  { %1362 = vmatmul.msk.bf16.gmra.mxu1 %vm79_vm0, %v1593_v17 }
 0x114   :  { %v200_v41 = vpop.f32.mrf.mxu2 }
 0x115   :  { %v266_v63 = vadd.f32 %v265_v48, %v200_v41 }
 0x11c   :  { %v203_v43 = vpop.f32.mrf.mxu2 }
 0x11d   :  { %v269_v61 = vadd.f32 %v268_v50, %v203_v43 }
 0x124   :  { %v206_v44 = vpop.f32.mrf.mxu2 }
 0x125   :  { %v272_v0 = vadd.f32 %v271_v53, %v206_v44 }
 0x12c   :  { %v209_v45 = vpop.f32.mrf.mxu2 }
 0x12d   :  { %v275_v3 = vadd.f32 %v274_v55, %v209_v45 }
 0x134   :  { %v212_v46 = vpop.f32.mrf.mxu2 }
 0x135   :  { %v278_v6 = vadd.f32 %v277_v57, %v212_v46 }
 0x13c   :  { %v215_v47 = vpop.f32.mrf.mxu2 }
 0x13d   :  { %v281_v10 = vadd.f32 %v280_v59, %v215_v47 }
 0x144   :  { %v218_v49 = vpop.f32.mrf.mxu2 }
 0x145   :  { %v284_v20 = vadd.f32 %v283_v2, %v218_v49 }
 0x147   :  { %v134_v34 = vpop.f32.mrf.mxu1 }
 0x148   :  { %1379 = vmatmul.msk.f32.vlgmr.msrb.gmra.mxu2 %vm158_vm1, %v134_v34 }
 0x14c   :  { %v221_v51 = vpop.f32.mrf.mxu2 }
 0x14d   :  { %v287_v31 = vadd.f32 %v286_v27, %v221_v51  ;;  %v568_v27 = vld [vmem:[%s1997_s5 + $0x18] sm:$0xff] }
 0x14f   :  { %v136_v35 = vpop.f32.mrf.mxu1 }
 0x150   :  { %1380 = vmatmul.msk.f32.gmra.mxu2 %vm158_vm1, %v136_v35 }
 0x157   :  { %v139_v36 = vpop.f32.mrf.mxu1 }
 0x158   :  { %1381 = vmatmul.msk.f32.gmra.mxu2 %vm158_vm1, %v139_v36 }
 0x15f   :  { %v141_v37 = vpop.f32.mrf.mxu1 }
 0x160   :  { %1382 = vmatmul.msk.f32.gmra.mxu2 %vm158_vm1, %v141_v37 }
 0x167   :  { %v144_v38 = vpop.f32.mrf.mxu1 }
 0x168   :  { %1383 = vmatmul.msk.f32.gmra.mxu2 %vm158_vm1, %v144_v38 }
 0x16f   :  { %v146_v39 = vpop.f32.mrf.mxu1 }
 0x170   :  { %1384 = vmatmul.msk.f32.gmra.mxu2 %vm158_vm1, %v146_v39  ;;  %v388_v39 = vsub.f32 1.0, %v387_v33 }
 0x177   :  { %v149_v40 = vpop.f32.mrf.mxu1 }
 0x178   :  { %1385 = vmatmul.msk.f32.gmra.mxu2 %vm158_vm1, %v149_v40 }
 0x17f   :  { %v151_v42 = vpop.f32.mrf.mxu1 }
 0x180   :  { %1386 = vmatmul.msk.f32.gmra.mxu2 %vm158_vm1, %v151_v42  ;;  %v389_v42 = vmul.f32 %v1467_v26, %v388_v39 }
 0x182   :  { %v390_v45 = vadd.f32 %v1467_v26, %v389_v42  ;;  %v1460_v42 = vld [vmem:[%s1995_s3] ss:$0 sm:$0xff] }
 0x184   :  { %v1649_v48 = vsel %vm391_vm3, %v1467_v26, %v390_v45 }
 0x1cb   :  { %v332_v52 = vpop.f32.mrf.mxu2 }
 0x1cc   :  { %v356_v4 = vadd.f32 %v332_v52, %v266_v63 }
 0x1ce   :  { %v365_v11 = vsel %vm364_vm2, %v356_v4, 0.0 }
 0x1d3   :  { %v335_v54 = vpop.f32.mrf.mxu2 }
 0x1d4   :  { %v357_v1 = vadd.f32 %v335_v54, %v269_v61 }
 0x1d6   :  { %v366_v7 = vsel %vm364_vm2, %v357_v1, 0.0 }
 0x1d7   :  { %v367_v18 = vadd.f32 %v366_v7, %v365_v11 }
 0x1db   :  { %v338_v56 = vpop.f32.mrf.mxu2 }
 0x1dc   :  { %v358_v5 = vadd.f32 %v338_v56, %v272_v0 }
 0x1de   :  { %v368_v14 = vsel %vm364_vm2, %v358_v5, 0.0 }
 0x1df   :  { %v369_v23 = vadd.f32 %v368_v14, %v367_v18 }
 0x1e3   :  { %v341_v58 = vpop.f32.mrf.mxu2 }
 0x1e4   :  { %v359_v8 = vadd.f32 %v341_v58, %v275_v3 }
 0x1e6   :  { %v370_v21 = vsel %vm364_vm2, %v359_v8, 0.0 }
 0x1e7   :  { %v371_v28 = vadd.f32 %v370_v21, %v369_v23  ;;  %v570_v23 = vld [vmem:[%s1997_s5 + $0x28] sm:$0xff] }
 0x1e8   :  { %676 = vmatpush.msra.mxu2 %v570_v23 }
 0x1eb   :  { %v344_v60 = vpop.f32.mrf.mxu2 }
 0x1ec   :  { %v360_v15 = vadd.f32 %v344_v60, %v278_v6 }
 0x1ee   :  { %v372_v24 = vsel %vm364_vm2, %v360_v15, 0.0 }
 0x1ef   :  { %v373_v30 = vadd.f32 %v372_v24, %v371_v28  ;;  %v567_v28 = vld [vmem:[%s1997_s5 + $0x10] sm:$0xff] }
 0x1f3   :  { %v347_v62 = vpop.f32.mrf.mxu2 }
 0x1f4   :  { %v361_v22 = vadd.f32 %v347_v62, %v281_v10 }
 0x1f6   :  { %v374_v29 = vsel %vm364_vm2, %v361_v22, 0.0 }
 0x1f7   :  { %v375_v34 = vadd.f32 %v374_v29, %v373_v30  ;;  %v566_v30 = vld [vmem:[%s1997_s5 + $0x8] sm:$0xff] }
 0x1fb   :  { %v350_v19 = vpop.f32.mrf.mxu2 }
 0x1fc   :  { %v362_v25 = vadd.f32 %v350_v19, %v284_v20 }
 0x1fe   :  { %v376_v32 = vsel %vm364_vm2, %v362_v25, 0.0 }
 0x1ff   :  { %v377_v37 = vadd.f32 %v376_v32, %v375_v34  ;;  %v565_v32 = vld [vmem:[%s1997_s5] sm:$0xff] }
 0x203   :  { %v353_v35 = vpop.f32.mrf.mxu2 }
 0x204   :  { %v363_v36 = vadd.f32 %v353_v35, %v287_v31 }
 0x206   :  { %v378_v38 = vsel %vm364_vm2, %v363_v36, 0.0 }
 0x207   :  { %v379_v40 = vadd.f32 %v378_v38, %v377_v37 }
 0x209   :  { %v380_v41 = vrot.slane %v379_v40, 4 }
 0x20b   :  { %v381_v43 = vadd.f32 %v380_v41, %v379_v40 }
 0x20d   :  { %v382_v44 = vrot.slane %v381_v43, 2 }
 0x20f   :  { %v383_v46 = vadd.f32 %v382_v44, %v381_v43 }
 0x211   :  { %v384_v47 = vrot.slane %v383_v46, 1 }
 0x213   :  { %v385_v49 = vadd.f32 %v384_v47, %v383_v46  ;;  %v1461_v46 = vld [vmem:[%s1996_s4] ss:$0 sm:$0xff] }
 0x215   :  { %v393_v50 = vmul.f32 %v1649_v48, %v385_v49 }
 0x217   :  { %v1652_v51 = vsub.f32 %v356_v4, %v393_v50  ;;  %v1654_v52 = vsub.f32 %v357_v1, %v393_v50  ;;  %v1656_v53 = vsub.f32 %v358_v5, %v393_v50  ;;  %v1658_v54 = vsub.f32 %v359_v8, %v393_v50 }
 0x218   :  { %v1660_v55 = vsub.f32 %v360_v15, %v393_v50  ;;  %v399_v59 = vsub.f32 %v361_v22, %v393_v50  ;;  %v400_v0 = vsub.f32 %v362_v25, %v393_v50  ;;  %v401_v4 = vsub.f32 %v363_v36, %v393_v50  ;;  %v569_v25 = vld [vmem:[%s1997_s5 + $0x20] sm:$0xff] }
 0x219   :  { %v402_v56 = vmul.f32 %v1652_v51, %v1652_v51  ;;  %v403_v57 = vmul.f32 %v1654_v52, %v1654_v52  ;;  %v404_v58 = vmul.f32 %v1656_v53, %v1656_v53  ;;  %v405_v60 = vmul.f32 %v1658_v54, %v1658_v54  ;;  %677 = vmatpush.msra.mxu2 %v569_v25 }
 0x21a   :  { %v406_v1 = vmul.f32 %v1660_v55, %v1660_v55  ;;  %v407_v5 = vmul.f32 %v399_v59, %v399_v59  ;;  %v408_v8 = vmul.f32 %v400_v0, %v400_v0  ;;  %v409_v11 = vmul.f32 %v401_v4, %v401_v4 }
 0x21b   :  { %v410_v61 = vsel %vm364_vm2, %v402_v56, 0.0  ;;  %v411_v62 = vsel %vm364_vm2, %v403_v57, 0.0  ;;  %v413_v2 = vsel %vm364_vm2, %v404_v58, 0.0  ;;  %v415_v6 = vsel %vm364_vm2, %v405_v60, 0.0  ;;  %678 = vmatpush.msra.mxu2 %v568_v27 }
 0x21c   :  { %v412_v63 = vadd.f32 %v411_v62, %v410_v61  ;;  %v417_v9 = vsel %vm364_vm2, %v406_v1, 0.0  ;;  %v419_v14 = vsel %vm364_vm2, %v407_v5, 0.0  ;;  %v421_v18 = vsel %vm364_vm2, %v408_v8, 0.0 }
 0x21d   :  { %v423_v20 = vsel %vm364_vm2, %v409_v11, 0.0  ;;  %679 = vmatpush.msra.mxu2 %v567_v28 }
 0x21e   :  { %v414_v3 = vadd.f32 %v413_v2, %v412_v63 }
 0x21f   :  { %680 = vmatpush.msra.mxu2 %v566_v30  ;;  %v576_v30 = vld [vmem:[%s1997_s5 + $0x58] sm:$0xff] }
 0x220   :  { %v416_v7 = vadd.f32 %v415_v6, %v414_v3  ;;  %611 = vmatpush.msra.mxu1 %v576_v30 }
 0x221   :  { %681 = vmatpush.msra.mxu2 %v565_v32  ;;  %v574_v32 = vld [vmem:[%s1997_s5 + $0x48] sm:$0xff] }
 0x222   :  { %v418_v10 = vadd.f32 %v417_v9, %v416_v7 }
 0x224   :  { %v420_v15 = vadd.f32 %v419_v14, %v418_v10 }
 0x226   :  { %v422_v19 = vadd.f32 %v421_v18, %v420_v15 }
 0x228   :  { %v424_v21 = vadd.f32 %v423_v20, %v422_v19 }
 0x22a   :  { %v425_v22 = vrot.slane %v424_v21, 4 }
 0x22c   :  { %v426_v24 = vadd.f32 %v425_v22, %v424_v21 }
 0x22e   :  { %v427_v26 = vrot.slane %v426_v24, 2 }
 0x230   :  { %v428_v29 = vadd.f32 %v427_v26, %v426_v24 }
 0x232   :  { %v429_v31 = vrot.slane %v428_v29, 1 }
 0x234   :  { %v430_v33 = vadd.f32 %v429_v31, %v428_v29  ;;  %v575_v31 = vld [vmem:[%s1997_s5 + $0x50] sm:$0xff] }
 0x235   :  { %612 = vmatpush.msra.mxu1 %v575_v31 }
 0x236   :  { %v431_v34 = vmul.f32 %v430_v33, %v1649_v48  ;;  %v573_v33 = vld [vmem:[%s1997_s5 + $0x40] sm:$0xff] }
 0x237   :  { %613 = vmatpush.msra.mxu1 %v574_v32 }
 0x238   :  { %v432_v35 = vadd.f32 1e-05, %v431_v34  ;;  %v572_v34 = vld [vmem:[%s1997_s5 + $0x38] sm:$0xff] }
 0x239   :  { %614 = vmatpush.msra.mxu1 %v573_v33 }
 0x23a   :  { %1468 = vrsqrt.f32 %v432_v35  ;;  %vm439_vm5 = vweird.f32 %v432_v35 }
 0x23b   :  { %615 = vmatpush.msra.mxu1 %v572_v34 }
 0x240   :  { %v1469_v36 = vpop.eup %1468 }
 0x241   :  { %v434_v37 = vmul.f32 %v1469_v36, %v432_v35  ;;  %vm440_vm4 = vweird.f32 %v1469_v36  ;;  %v571_v35 = vld [vmem:[%s1997_s5 + $0x30] sm:$0xff] }
 0x242   :  { %vm441_vm6 = vmor %vm439_vm5, %vm440_vm4  ;;  %616 = vmatpush.msra.mxu1 %v571_v35 }
 0x243   :  { %v435_v38 = vmul.f32 %v1469_v36, %v434_v37 }
 0x245   :  { %v436_v39 = vmul.f32 0.5, %v435_v38 }
 0x247   :  { %v437_v40 = vsub.f32 1.5, %v436_v39 }
 0x249   :  { %v438_v41 = vmul.f32 %v1469_v36, %v437_v40 }
 0x24b   :  { %v442_v43 = vsel %vm441_vm6, %v1469_v36, %v438_v41 }
 0x24c   :  { %v450_v44 = vmul.f32 %v442_v43, %v401_v4  ;;  %v443_v45 = vmul.f32 %v442_v43, %v1652_v51  ;;  %v449_v47 = vmul.f32 %v442_v43, %v400_v0  ;;  %v447_v49 = vmul.f32 %v442_v43, %v1660_v55 }
 0x24d   :  { %v448_v50 = vmul.f32 %v442_v43, %v399_v59  ;;  %v444_v56 = vmul.f32 %v442_v43, %v1654_v52  ;;  %v445_v57 = vmul.f32 %v442_v43, %v1656_v53  ;;  %v446_v58 = vmul.f32 %v442_v43, %v1658_v54 }
 0x24e   :  { %v462_v60 = vmul.f32 %v1460_v42, %v450_v44  ;;  %v455_v61 = vmul.f32 %v1460_v42, %v443_v45  ;;  %v461_v62 = vmul.f32 %v1460_v42, %v449_v47  ;;  %v459_v63 = vmul.f32 %v1460_v42, %v447_v49  ;;  %v712_v49 = vld [vmem:[%s1997_s5 + $0x88] sm:$0xff] }
 0x24f   :  { %v460_v1 = vmul.f32 %v1460_v42, %v448_v50  ;;  %v456_v51 = vmul.f32 %v1460_v42, %v444_v56  ;;  %v457_v2 = vmul.f32 %v1460_v42, %v445_v57  ;;  %v458_v3 = vmul.f32 %v1460_v42, %v446_v58  ;;  %v711_v50 = vld [vmem:[%s1997_s5 + $0x80] sm:$0xff] }
 0x250   :  { %v467_v4 = vadd.f32 %v1461_v46, %v455_v61  ;;  %v473_v5 = vadd.f32 %v1461_v46, %v461_v62  ;;  %v474_v0 = vadd.f32 %v1461_v46, %v462_v60  ;;  %v471_v6 = vadd.f32 %v1461_v46, %v459_v63 }
 0x251   :  { %v472_v55 = vadd.f32 %v1461_v46, %v460_v1  ;;  %v468_v59 = vadd.f32 %v1461_v46, %v456_v51  ;;  %v469_v7 = vadd.f32 %v1461_v46, %v457_v2  ;;  %v470_v8 = vadd.f32 %v1461_v46, %v458_v3 }
 0x252   :  { %vm475_vm7 = vcmp.gt.f32.partialorder %v467_v4, 0.0  ;;  %v483_v52 = vmul.f32 0.1, %v467_v4  ;;  %vm481_vm8 = vcmp.gt.f32.partialorder %v473_v5, 0.0  ;;  %vm482_vm9 = vcmp.gt.f32.partialorder %v474_v0, 0.0 }
 0x253   :  { %v489_v53 = vmul.f32 0.1, %v473_v5  ;;  %v490_v54 = vmul.f32 0.1, %v474_v0  ;;  %vm479_vm10 = vcmp.gt.f32.partialorder %v471_v6, 0.0  ;;  %vm480_vm11 = vcmp.gt.f32.partialorder %v472_v55, 0.0 }
 0x254   :  { %v491_v9 = vsel %vm475_vm7, %v467_v4, %v483_v52  ;;  %v487_v10 = vmul.f32 0.1, %v471_v6  ;;  %v488_v11 = vmul.f32 0.1, %v472_v55  ;;  %v485_v21 = vmul.f32 0.1, %v469_v7 }
 0x255   :  { %1403 = vmatmul.msk.f32.vlgmr.msra.gmra.mxu2 %vm364_vm2, %v491_v9  ;;  %v497_v14 = vsel %vm481_vm8, %v473_v5, %v489_v53  ;;  %v498_v15 = vsel %vm482_vm9, %v474_v0, %v490_v54  ;;  %v486_v22 = vmul.f32 0.1, %v470_v8  ;;  %v484_v23 = vmul.f32 0.1, %v468_v59 }
 0x256   :  { %v502_v18 = vpack.c.bf16 %v498_v15, %v497_v14  ;;  %v495_v19 = vsel %vm479_vm10, %v471_v6, %v487_v10  ;;  %v496_v20 = vsel %vm480_vm11, %v472_v55, %v488_v11  ;;  %vm477_vm12 = vcmp.gt.f32.partialorder %v469_v7, 0.0 }
 0x257   :  { %vm478_vm13 = vcmp.gt.f32.partialorder %v470_v8, 0.0  ;;  %vm476_vm14 = vcmp.gt.f32.partialorder %v468_v59, 0.0  ;;  %v501_v24 = vpack.c.bf16 %v496_v20, %v495_v19  ;;  %v493_v25 = vsel %vm477_vm12, %v469_v7, %v485_v21 }
 0x258   :  { %507 = vmatpush.bf16.msrb.mxu3 %v502_v18  ;;  %v494_v26 = vsel %vm478_vm13, %v470_v8, %v486_v22  ;;  %v492_v27 = vsel %vm476_vm14, %v468_v59, %v484_v23 }
 0x259   :  { %v500_v28 = vpack.c.bf16 %v494_v26, %v493_v25  ;;  %v499_v29 = vpack.c.bf16 %v492_v27, %v491_v9 }
 0x25c   :  { %508 = vmatpush.bf16.msrb.mxu3 %v501_v24 }
 0x25d   :  { %1404 = vmatmul.msk.f32.gmra.mxu2 %vm364_vm2, %v492_v27 }
 0x260   :  { %509 = vmatpush.bf16.msrb.mxu3 %v500_v28 }
 0x264   :  { %510 = vmatpush.bf16.msrb.mxu3 %v499_v29 }
 0x265   :  { %1405 = vmatmul.msk.f32.gmra.mxu2 %vm364_vm2, %v493_v25 }
 0x267   :  { %1387 = vmatmul.msk.bf16.vlgmr.msrb.gmra.mxu3 %vm79_vm0, %v1566_v12 }
 0x268   :  { %747 = vmatpush.msra.mxu3 %v712_v49 }
 0x26a   :  { %748 = vmatpush.msra.mxu3 %v711_v50 }
 0x26d   :  { %1406 = vmatmul.msk.f32.gmra.mxu2 %vm364_vm2, %v494_v26 }
 0x275   :  { %1407 = vmatmul.msk.f32.gmra.mxu2 %vm364_vm2, %v495_v19 }
 0x277   :  { %1388 = vmatmul.msk.bf16.gmra.mxu3 %vm79_vm0, %v1571_v13 }
 0x27d   :  { %1408 = vmatmul.msk.f32.gmra.mxu2 %vm364_vm2, %v496_v20 }
 0x285   :  { %1409 = vmatmul.msk.f32.gmra.mxu2 %vm364_vm2, %v497_v14 }
 0x287   :  { %1389 = vmatmul.msk.bf16.gmra.mxu3 %vm79_vm0, %v1586_v16 }
 0x28d   :  { %1410 = vmatmul.msk.f32.gmra.mxu2 %vm364_vm2, %v498_v15 }
 0x297   :  { %1390 = vmatmul.msk.bf16.gmra.mxu3 %vm79_vm0, %v1593_v17 }
 0x2d8   :  { %v683_v2 = vpop.f32.mrf.mxu2 }
 0x2e0   :  { %v686_v4 = vpop.f32.mrf.mxu2 }
 0x2e8   :  { %v689_v6 = vpop.f32.mrf.mxu2 }
 0x2ea   :  { %v512_v36 = vpop.f32.mrf.mxu3 }
 0x2eb   :  { %1395 = vmatmul.msk.f32.vlgmr.msra.gmra.mxu1 %vm364_vm2, %v512_v36 }
 0x2f0   :  { %v692_v7 = vpop.f32.mrf.mxu2 }
 0x2f2   :  { %v514_v37 = vpop.f32.mrf.mxu3 }
 0x2f3   :  { %1396 = vmatmul.msk.f32.gmra.mxu1 %vm364_vm2, %v514_v37  ;;  %v532_v47 = vpack.c.bf16 %v514_v37, %v512_v36 }
 0x2f8   :  { %v695_v54 = vpop.f32.mrf.mxu2 }
 0x2fa   :  { %v517_v38 = vpop.f32.mrf.mxu3 }
 0x2fb   :  { %1397 = vmatmul.msk.f32.gmra.mxu1 %vm364_vm2, %v517_v38 }
 0x300   :  { %v698_v11 = vpop.f32.mrf.mxu2 }
 0x302   :  { %v519_v39 = vpop.f32.mrf.mxu3 }
 0x303   :  { %1398 = vmatmul.msk.f32.gmra.mxu1 %vm364_vm2, %v519_v39  ;;  %v533_v46 = vpack.c.bf16 %v519_v39, %v517_v38 }
 0x308   :  { %v701_v25 = vpop.f32.mrf.mxu2 }
 0x30a   :  { %v522_v40 = vpop.f32.mrf.mxu3 }
 0x30b   :  { %1399 = vmatmul.msk.f32.gmra.mxu1 %vm364_vm2, %v522_v40 }
 0x312   :  { %v524_v41 = vpop.f32.mrf.mxu3 }
 0x313   :  { %1400 = vmatmul.msk.f32.gmra.mxu1 %vm364_vm2, %v524_v41  ;;  %v534_v45 = vpack.c.bf16 %v524_v41, %v522_v40 }
 0x31a   :  { %v527_v42 = vpop.f32.mrf.mxu3 }
 0x31b   :  { %1401 = vmatmul.msk.f32.gmra.mxu1 %vm364_vm2, %v527_v42 }
 0x322   :  { %v529_v43 = vpop.f32.mrf.mxu3 }
 0x323   :  { %1402 = vmatmul.msk.f32.gmra.mxu1 %vm364_vm2, %v529_v43  ;;  %v535_v44 = vpack.c.bf16 %v529_v43, %v527_v42 }
 0x325   :  { %540 = vmatpush.bf16.msrb.mxu0 %v535_v44  ;;  %v704_v44 = vpop.f32.mrf.mxu2 }
 0x329   :  { %541 = vmatpush.bf16.msrb.mxu0 %v534_v45 }
 0x32d   :  { %542 = vmatpush.bf16.msrb.mxu0 %v533_v46 }
 0x331   :  { %543 = vmatpush.bf16.msrb.mxu0 %v532_v47 }
 0x334   :  { %1391 = vmatmul.msk.bf16.vlgmr.msrb.gmra.mxu0 %vm79_vm0, %v1566_v12  ;;  %v710_v12 = vld [vmem:[%s1997_s5 + $0x78] sm:$0xff] }
 0x335   :  { %749 = vmatpush.msra.mxu3 %v710_v12 }
 0x344   :  { %1392 = vmatmul.msk.bf16.gmra.mxu0 %vm79_vm0, %v1571_v13  ;;  %v709_v13 = vld [vmem:[%s1997_s5 + $0x70] sm:$0xff] }
 0x345   :  { %750 = vmatpush.msra.mxu3 %v709_v13 }
 0x354   :  { %1393 = vmatmul.msk.bf16.gmra.mxu0 %vm79_vm0, %v1586_v16  ;;  %v708_v16 = vld [vmem:[%s1997_s5 + $0x68] sm:$0xff] }
 0x355   :  { %751 = vmatpush.msra.mxu3 %v708_v16 }
 0x364   :  { %1394 = vmatmul.msk.bf16.gmra.mxu0 %vm79_vm0, %v1593_v17  ;;  %v707_v17 = vld [vmem:[%s1997_s5 + $0x60] sm:$0xff] }
 0x365   :  { %752 = vmatpush.msra.mxu3 %v707_v17 }
 0x368   :  { %v618_v51 = vpop.f32.mrf.mxu1 }
 0x369   :  { %v684_v18 = vadd.f32 %v683_v2, %v618_v51 }
 0x370   :  { %v621_v3 = vpop.f32.mrf.mxu1 }
 0x371   :  { %v687_v14 = vadd.f32 %v686_v4, %v621_v3 }
 0x378   :  { %v624_v0 = vpop.f32.mrf.mxu1 }
 0x379   :  { %v690_v19 = vadd.f32 %v689_v6, %v624_v0 }
 0x380   :  { %v627_v59 = vpop.f32.mrf.mxu1 }
 0x381   :  { %v693_v22 = vadd.f32 %v692_v7, %v627_v59 }
 0x388   :  { %v630_v53 = vpop.f32.mrf.mxu1 }
 0x389   :  { %v696_v26 = vadd.f32 %v695_v54, %v630_v53 }
 0x390   :  { %v633_v9 = vpop.f32.mrf.mxu1 }
 0x391   :  { %v699_v29 = vadd.f32 %v698_v11, %v633_v9 }
 0x398   :  { %v636_v21 = vpop.f32.mrf.mxu1 }
 0x399   :  { %v702_v35 = vadd.f32 %v701_v25, %v636_v21 }
 0x3a0   :  { %v639_v41 = vpop.f32.mrf.mxu1 }
 0x3a1   :  { %v705_v46 = vadd.f32 %v704_v44, %v639_v41 }
 0x3b1   :  { %v545_v56 = vpop.f32.mrf.mxu0 }
 0x3b2   :  { %1411 = vmatmul.msk.f32.vlgmr.msra.gmra.mxu3 %vm364_vm2, %v545_v56 }
 0x3b9   :  { %v547_v57 = vpop.f32.mrf.mxu0 }
 0x3ba   :  { %1412 = vmatmul.msk.f32.gmra.mxu3 %vm364_vm2, %v547_v57 }
 0x3c1   :  { %v550_v58 = vpop.f32.mrf.mxu0 }
 0x3c2   :  { %1413 = vmatmul.msk.f32.gmra.mxu3 %vm364_vm2, %v550_v58 }
 0x3c9   :  { %v552_v60 = vpop.f32.mrf.mxu0 }
 0x3ca   :  { %1414 = vmatmul.msk.f32.gmra.mxu3 %vm364_vm2, %v552_v60 }
 0x3d1   :  { %v555_v61 = vpop.f32.mrf.mxu0 }
 0x3d2   :  { %1415 = vmatmul.msk.f32.gmra.mxu3 %vm364_vm2, %v555_v61 }
 0x3d9   :  { %v557_v62 = vpop.f32.mrf.mxu0 }
 0x3da   :  { %1416 = vmatmul.msk.f32.gmra.mxu3 %vm364_vm2, %v557_v62 }
 0x3e1   :  { %v560_v63 = vpop.f32.mrf.mxu0 }
 0x3e2   :  { %1417 = vmatmul.msk.f32.gmra.mxu3 %vm364_vm2, %v560_v63 }
 0x3e9   :  { %v562_v1 = vpop.f32.mrf.mxu0 }
 0x3ea   :  { %1418 = vmatmul.msk.f32.gmra.mxu3 %vm364_vm2, %v562_v1 }
 0x435   :  { %v754_v5 = vpop.f32.mrf.mxu3 }
 0x436   :  { %v778_v23 = vadd.f32 %v754_v5, %v684_v18 }
 0x438   :  { %v786_v30 = vsel %vm364_vm2, %v778_v23, 0.0 }
 0x43d   :  { %v757_v55 = vpop.f32.mrf.mxu3 }
 0x43e   :  { %v779_v20 = vadd.f32 %v757_v55, %v687_v14 }
 0x440   :  { %v787_v27 = vsel %vm364_vm2, %v779_v20, 0.0 }
 0x441   :  { %v788_v33 = vadd.f32 %v787_v27, %v786_v30 }
 0x445   :  { %v760_v52 = vpop.f32.mrf.mxu3 }
 0x446   :  { %v780_v24 = vadd.f32 %v760_v52, %v690_v19 }
 0x448   :  { %v789_v31 = vsel %vm364_vm2, %v780_v24, 0.0 }
 0x449   :  { %v790_v38 = vadd.f32 %v789_v31, %v788_v33  ;;  %v984_v31 = vld [vmem:[%s2000_s8 + $0x28] sm:$0xff]  ;;  %v983_v33 = vld [vmem:[%s2000_s8 + $0x20] sm:$0xff] }
 0x44a   :  { %1090 = vmatpush.msrb.mxu3 %v984_v31 }
 0x44c   :  { %1091 = vmatpush.msrb.mxu3 %v983_v33  ;;  %v1474_v33 = vld [vmem:[%s1993_s0] sm:$0xff] }
 0x44d   :  { %v763_v8 = vpop.f32.mrf.mxu3 }
 0x44e   :  { %v781_v28 = vadd.f32 %v763_v8, %v693_v22 }
 0x450   :  { %v791_v36 = vsel %vm364_vm2, %v781_v28, 0.0 }
 0x451   :  { %v792_v42 = vadd.f32 %v791_v36, %v790_v38  ;;  %v981_v36 = vld [vmem:[%s2000_s8 + $0x10] sm:$0xff]  ;;  %v980_v38 = vld [vmem:[%s2000_s8 + $0x8] sm:$0xff] }
 0x455   :  { %v766_v10 = vpop.f32.mrf.mxu3 }
 0x456   :  { %v782_v32 = vadd.f32 %v766_v10, %v696_v26 }
 0x458   :  { %v793_v39 = vsel %vm364_vm2, %v782_v32, 0.0 }
 0x459   :  { %v794_v45 = vadd.f32 %v793_v39, %v792_v42 }
 0x45d   :  { %v769_v15 = vpop.f32.mrf.mxu3 }
 0x45e   :  { %v783_v37 = vadd.f32 %v769_v15, %v699_v29 }
 0x460   :  { %v795_v43 = vsel %vm364_vm2, %v783_v37, 0.0 }
 0x461   :  { %v796_v49 = vadd.f32 %v795_v43, %v794_v45 }
 0x465   :  { %v772_v34 = vpop.f32.mrf.mxu3 }
 0x466   :  { %v784_v40 = vadd.f32 %v772_v34, %v702_v35  ;;  %v982_v35 = vld [vmem:[%s2000_s8 + $0x18] sm:$0xff] }
 0x467   :  { %1092 = vmatpush.msrb.mxu3 %v982_v35  ;;  %v1476_v35 = vld [vmem:[%s1993_s0 + $0x10] sm:$0xff] }
 0x468   :  { %v797_v47 = vsel %vm364_vm2, %v784_v40, 0.0 }
 0x469   :  { %v798_v13 = vadd.f32 %v797_v47, %v796_v49  ;;  %1093 = vmatpush.msrb.mxu3 %v981_v36  ;;  %v1477_v36 = vld [vmem:[%s1993_s0 + $0x18] sm:$0xff] }
 0x46b   :  { %1094 = vmatpush.msrb.mxu3 %v980_v38  ;;  %v989_v38 = vld [vmem:[%s2000_s8 + $0x50] sm:$0xff] }
 0x46d   :  { %v775_v50 = vpop.f32.mrf.mxu3 }
 0x46e   :  { %v785_v12 = vadd.f32 %v775_v50, %v705_v46  ;;  %v1462_v50 = vld [vmem:[%s1998_s6] ss:$0 sm:$0xff] }
 0x470   :  { %v799_v16 = vsel %vm364_vm2, %v785_v12, 0.0 }
 0x471   :  { %v800_v17 = vadd.f32 %v799_v16, %v798_v13 }
 0x473   :  { %v801_v56 = vrot.slane %v800_v17, 4 }
 0x475   :  { %v802_v57 = vadd.f32 %v801_v56, %v800_v17  ;;  %v1463_v17 = vld [vmem:[%s1999_s7] ss:$0 sm:$0xff] }
 0x477   :  { %v803_v58 = vrot.slane %v802_v57, 2 }
 0x479   :  { %v804_v60 = vadd.f32 %v803_v58, %v802_v57 }
 0x47b   :  { %v805_v61 = vrot.slane %v804_v60, 1 }
 0x47d   :  { %v806_v62 = vadd.f32 %v805_v61, %v804_v60 }
 0x47f   :  { %v807_v63 = vmul.f32 %v806_v62, %v1649_v48 }
 0x481   :  { %v1795_v1 = vsub.f32 %v778_v23, %v807_v63  ;;  %v1797_v51 = vsub.f32 %v779_v20, %v807_v63  ;;  %v1799_v2 = vsub.f32 %v780_v24, %v807_v63  ;;  %v1801_v3 = vsub.f32 %v781_v28, %v807_v63 }
 0x482   :  { %v1803_v4 = vsub.f32 %v782_v32, %v807_v63  ;;  %v813_v55 = vsub.f32 %v783_v37, %v807_v63  ;;  %v814_v54 = vsub.f32 %v784_v40, %v807_v63  ;;  %v815_v11 = vsub.f32 %v785_v12, %v807_v63  ;;  %v979_v40 = vld [vmem:[%s2000_s8] sm:$0xff] }
 0x483   :  { %v816_v5 = vmul.f32 %v1795_v1, %v1795_v1  ;;  %v817_v0 = vmul.f32 %v1797_v51, %v1797_v51  ;;  %v818_v6 = vmul.f32 %v1799_v2, %v1799_v2  ;;  %v819_v59 = vmul.f32 %v1801_v3, %v1801_v3  ;;  %1095 = vmatpush.msrb.mxu3 %v979_v40  ;;  %v987_v40 = vld [vmem:[%s2000_s8 + $0x40] sm:$0xff] }
 0x484   :  { %v820_v8 = vmul.f32 %v1803_v4, %v1803_v4  ;;  %v821_v14 = vmul.f32 %v813_v55, %v813_v55  ;;  %v822_v19 = vmul.f32 %v814_v54, %v814_v54  ;;  %v823_v22 = vmul.f32 %v815_v11, %v815_v11 }
 0x485   :  { %v824_v7 = vsel %vm364_vm2, %v816_v5, 0.0  ;;  %v825_v52 = vsel %vm364_vm2, %v817_v0, 0.0  ;;  %v827_v9 = vsel %vm364_vm2, %v818_v6, 0.0  ;;  %v829_v15 = vsel %vm364_vm2, %v819_v59, 0.0 }
 0x486   :  { %v826_v53 = vadd.f32 %v825_v52, %v824_v7  ;;  %v831_v20 = vsel %vm364_vm2, %v820_v8, 0.0  ;;  %v833_v23 = vsel %vm364_vm2, %v821_v14, 0.0  ;;  %v835_v25 = vsel %vm364_vm2, %v822_v19, 0.0 }
 0x487   :  { %v837_v27 = vsel %vm364_vm2, %v823_v22, 0.0 }
 0x488   :  { %v828_v10 = vadd.f32 %v827_v9, %v826_v53 }
 0x48a   :  { %v830_v18 = vadd.f32 %v829_v15, %v828_v10 }
 0x48c   :  { %v832_v21 = vadd.f32 %v831_v20, %v830_v18 }
 0x48e   :  { %v834_v24 = vadd.f32 %v833_v23, %v832_v21 }
 0x490   :  { %v836_v26 = vadd.f32 %v835_v25, %v834_v24 }
 0x492   :  { %v838_v28 = vadd.f32 %v837_v27, %v836_v26 }
 0x494   :  { %v839_v29 = vrot.slane %v838_v28, 4 }
 0x496   :  { %v840_v30 = vadd.f32 %v839_v29, %v838_v28 }
 0x498   :  { %v841_v32 = vrot.slane %v840_v30, 2 }
 0x49a   :  { %v842_v34 = vadd.f32 %v841_v32, %v840_v30 }
 0x49c   :  { %v843_v37 = vrot.slane %v842_v34, 1 }
 0x49e   :  { %v844_v39 = vadd.f32 %v843_v37, %v842_v34  ;;  %v1475_v34 = vld [vmem:[%s1993_s0 + $0x8] sm:$0xff]  ;;  %v990_v37 = vld [vmem:[%s2000_s8 + $0x58] sm:$0xff] }
 0x49f   :  { %1025 = vmatpush.msrb.mxu2 %v990_v37 }
 0x4a0   :  { %v845_v41 = vmul.f32 %v844_v39, %v1649_v48  ;;  %v988_v39 = vld [vmem:[%s2000_s8 + $0x48] sm:$0xff] }
 0x4a1   :  { %1026 = vmatpush.msrb.mxu2 %v989_v38 }
 0x4a2   :  { %v846_v42 = vadd.f32 1e-05, %v845_v41  ;;  %v986_v41 = vld [vmem:[%s2000_s8 + $0x38] sm:$0xff] }
 0x4a3   :  { %1027 = vmatpush.msrb.mxu2 %v988_v39 }
 0x4a4   :  { %1470 = vrsqrt.f32 %v846_v42  ;;  %vm853_vm1 = vweird.f32 %v846_v42 }
 0x4a5   :  { %1028 = vmatpush.msrb.mxu2 %v987_v40 }
 0x4a7   :  { %1029 = vmatpush.msrb.mxu2 %v986_v41 }
 0x4aa   :  { %v1471_v43 = vpop.eup %1470 }
 0x4ab   :  { %v848_v44 = vmul.f32 %v1471_v43, %v846_v42  ;;  %vm854_vm15 = vweird.f32 %v1471_v43  ;;  %v985_v42 = vld [vmem:[%s2000_s8 + $0x30] sm:$0xff] }
 0x4ac   :  { %vm855_vm3 = vmor %vm853_vm1, %vm854_vm15  ;;  %1030 = vmatpush.msrb.mxu2 %v985_v42 }
 0x4ad   :  { %v849_v45 = vmul.f32 %v1471_v43, %v848_v44 }
 0x4af   :  { %v850_v46 = vmul.f32 0.5, %v849_v45 }
 0x4b1   :  { %v851_v47 = vsub.f32 1.5, %v850_v46 }
 0x4b3   :  { %v852_v49 = vmul.f32 %v1471_v43, %v851_v47 }
 0x4b5   :  { %v856_v12 = vsel %vm855_vm3, %v1471_v43, %v852_v49 }
 0x4b6   :  { %v863_v13 = vmul.f32 %v856_v12, %v814_v54  ;;  %v864_v16 = vmul.f32 %v856_v12, %v815_v11  ;;  %v857_v56 = vmul.f32 %v856_v12, %v1795_v1  ;;  %v861_v57 = vmul.f32 %v856_v12, %v1803_v4 }
 0x4b7   :  { %v862_v58 = vmul.f32 %v856_v12, %v813_v55  ;;  %v858_v60 = vmul.f32 %v856_v12, %v1797_v51  ;;  %v859_v61 = vmul.f32 %v856_v12, %v1799_v2  ;;  %v860_v62 = vmul.f32 %v856_v12, %v1801_v3 }
 0x4b8   :  { %v876_v63 = vmul.f32 %v1462_v50, %v864_v16  ;;  %v869_v5 = vmul.f32 %v1462_v50, %v857_v56  ;;  %v875_v0 = vmul.f32 %v1462_v50, %v863_v13  ;;  %v873_v6 = vmul.f32 %v1462_v50, %v861_v57  ;;  %v1126_v57 = vld [vmem:[%s2000_s8 + $0x88] sm:$0xff] }
 0x4b9   :  { %v874_v59 = vmul.f32 %v1462_v50, %v862_v58  ;;  %v870_v7 = vmul.f32 %v1462_v50, %v858_v60  ;;  %v871_v52 = vmul.f32 %v1462_v50, %v859_v61  ;;  %v872_v53 = vmul.f32 %v1462_v50, %v860_v62  ;;  %v1125_v58 = vld [vmem:[%s2000_s8 + $0x80] sm:$0xff]  ;;  %v1124_v60 = vld [vmem:[%s2000_s8 + $0x78] sm:$0xff]  ;;  %v1123_v61 = vld [vmem:[%s2000_s8 + $0x70] sm:$0xff] }
 0x4ba   :  { %v888_v54 = vadd.f32 %v1463_v17, %v876_v63  ;;  %v881_v8 = vadd.f32 %v1463_v17, %v869_v5  ;;  %v887_v1 = vadd.f32 %v1463_v17, %v875_v0  ;;  %v885_v9 = vadd.f32 %v1463_v17, %v873_v6  ;;  %v1122_v62 = vld [vmem:[%s2000_s8 + $0x68] sm:$0xff]  ;;  %v1121_v63 = vld [vmem:[%s2000_s8 + $0x60] sm:$0xff] }
 0x4bb   :  { %v886_v4 = vadd.f32 %v1463_v17, %v874_v59  ;;  %v882_v55 = vadd.f32 %v1463_v17, %v870_v7  ;;  %v883_v10 = vadd.f32 %v1463_v17, %v871_v52  ;;  %v884_v11 = vadd.f32 %v1463_v17, %v872_v53 }
 0x4bc   :  { %vm889_vm4 = vcmp.gt.f32.partialorder %v881_v8, 0.0  ;;  %v897_v51 = vmul.f32 0.1, %v881_v8  ;;  %vm895_vm5 = vcmp.gt.f32.partialorder %v887_v1, 0.0  ;;  %vm896_vm6 = vcmp.gt.f32.partialorder %v888_v54, 0.0 }
 0x4bd   :  { %v903_v2 = vmul.f32 0.1, %v887_v1  ;;  %v904_v3 = vmul.f32 0.1, %v888_v54  ;;  %vm893_vm7 = vcmp.gt.f32.partialorder %v885_v9, 0.0  ;;  %vm894_vm8 = vcmp.gt.f32.partialorder %v886_v4, 0.0 }
 0x4be   :  { %v905_v14 = vsel %vm889_vm4, %v881_v8, %v897_v51  ;;  %v901_v15 = vmul.f32 0.1, %v885_v9  ;;  %v902_v18 = vmul.f32 0.1, %v886_v4  ;;  %v899_v24 = vmul.f32 0.1, %v883_v10 }
 0x4bf   :  { %1435 = vmatmul.msk.f32.vlgmr.msrb.gmra.mxu3 %vm364_vm2, %v905_v14  ;;  %v911_v19 = vsel %vm895_vm5, %v887_v1, %v903_v2  ;;  %v912_v20 = vsel %vm896_vm6, %v888_v54, %v904_v3  ;;  %v900_v25 = vmul.f32 0.1, %v884_v11  ;;  %v898_v26 = vmul.f32 0.1, %v882_v55 }
 0x4c0   :  { %v916_v21 = vpack.c.bf16 %v912_v20, %v911_v19  ;;  %v909_v22 = vsel %vm893_vm7, %v885_v9, %v901_v15  ;;  %v910_v23 = vsel %vm894_vm8, %v886_v4, %v902_v18  ;;  %vm891_vm9 = vcmp.gt.f32.partialorder %v883_v10, 0.0 }
 0x4c1   :  { %vm892_vm10 = vcmp.gt.f32.partialorder %v884_v11, 0.0  ;;  %vm890_vm11 = vcmp.gt.f32.partialorder %v882_v55, 0.0  ;;  %v915_v27 = vpack.c.bf16 %v910_v23, %v909_v22  ;;  %v907_v28 = vsel %vm891_vm9, %v883_v10, %v899_v24 }
 0x4c2   :  { %921 = vmatpush.bf16.msra.mxu0 %v916_v21  ;;  %v908_v29 = vsel %vm892_vm10, %v884_v11, %v900_v25  ;;  %v906_v30 = vsel %vm890_vm11, %v882_v55, %v898_v26 }
 0x4c3   :  { %v914_v31 = vpack.c.bf16 %v908_v29, %v907_v28  ;;  %v913_v32 = vpack.c.bf16 %v906_v30, %v905_v14 }
 0x4c6   :  { %922 = vmatpush.bf16.msra.mxu0 %v915_v27 }
 0x4c7   :  { %1436 = vmatmul.msk.f32.gmra.mxu3 %vm364_vm2, %v906_v30 }
 0x4ca   :  { %923 = vmatpush.bf16.msra.mxu0 %v914_v31 }
 0x4ce   :  { %924 = vmatpush.bf16.msra.mxu0 %v913_v32 }
 0x4cf   :  { %1437 = vmatmul.msk.f32.gmra.mxu3 %vm364_vm2, %v907_v28 }
 0x4d1   :  { %1419 = vmatmul.msk.bf16.vlgmr.msra.gmra.mxu0 %vm79_vm0, %v1474_v33 }
 0x4d2   :  { %1161 = vmatpush.msrb.mxu0 %v1126_v57 }
 0x4d4   :  { %1162 = vmatpush.msrb.mxu0 %v1125_v58 }
 0x4d6   :  { %1163 = vmatpush.msrb.mxu0 %v1124_v60 }
 0x4d7   :  { %1438 = vmatmul.msk.f32.gmra.mxu3 %vm364_vm2, %v908_v29 }
 0x4d8   :  { %1164 = vmatpush.msrb.mxu0 %v1123_v61 }
 0x4da   :  { %1165 = vmatpush.msrb.mxu0 %v1122_v62 }
 0x4dc   :  { %1166 = vmatpush.msrb.mxu0 %v1121_v63 }
 0x4df   :  { %1439 = vmatmul.msk.f32.gmra.mxu3 %vm364_vm2, %v909_v22 }
 0x4e1   :  { %1420 = vmatmul.msk.bf16.gmra.mxu0 %vm79_vm0, %v1475_v34 }
 0x4e7   :  { %1440 = vmatmul.msk.f32.gmra.mxu3 %vm364_vm2, %v910_v23 }
 0x4ef   :  { %1441 = vmatmul.msk.f32.gmra.mxu3 %vm364_vm2, %v911_v19 }
 0x4f1   :  { %1421 = vmatmul.msk.bf16.gmra.mxu0 %vm79_vm0, %v1476_v35 }
 0x4f7   :  { %1442 = vmatmul.msk.f32.gmra.mxu3 %vm364_vm2, %v912_v20 }
 0x501   :  { %1422 = vmatmul.msk.bf16.gmra.mxu0 %vm79_vm0, %v1477_v36 }
 0x542   :  { %v1097_v1 = vpop.f32.mrf.mxu3 }
 0x54a   :  { %v1100_v4 = vpop.f32.mrf.mxu3 }
 0x54e   :  { %v926_v43 = vpop.f32.mrf.mxu0 }
 0x54f   :  { %1427 = vmatmul.msk.f32.vlgmr.msrb.gmra.mxu2 %vm364_vm2, %v926_v43 }
 0x552   :  { %v1103_v51 = vpop.f32.mrf.mxu3 }
 0x556   :  { %v928_v44 = vpop.f32.mrf.mxu0 }
 0x557   :  { %1428 = vmatmul.msk.f32.gmra.mxu2 %vm364_vm2, %v928_v44  ;;  %v946_v56 = vpack.c.bf16 %v928_v44, %v926_v43 }
 0x55a   :  { %v1106_v11 = vpop.f32.mrf.mxu3 }
 0x55e   :  { %v931_v45 = vpop.f32.mrf.mxu0 }
 0x55f   :  { %1429 = vmatmul.msk.f32.gmra.mxu2 %vm364_vm2, %v931_v45 }
 0x562   :  { %v1109_v18 = vpop.f32.mrf.mxu3 }
 0x566   :  { %v933_v46 = vpop.f32.mrf.mxu0 }
 0x567   :  { %1430 = vmatmul.msk.f32.gmra.mxu2 %vm364_vm2, %v933_v46  ;;  %v947_v17 = vpack.c.bf16 %v933_v46, %v931_v45 }
 0x56a   :  { %v1112_v22 = vpop.f32.mrf.mxu3 }
 0x56e   :  { %v936_v47 = vpop.f32.mrf.mxu0 }
 0x56f   :  { %1431 = vmatmul.msk.f32.gmra.mxu2 %vm364_vm2, %v936_v47 }
 0x572   :  { %v1115_v32 = vpop.f32.mrf.mxu3 }
 0x576   :  { %v938_v49 = vpop.f32.mrf.mxu0 }
 0x577   :  { %1432 = vmatmul.msk.f32.gmra.mxu2 %vm364_vm2, %v938_v49  ;;  %v948_v16 = vpack.c.bf16 %v938_v49, %v936_v47 }
 0x57e   :  { %v941_v50 = vpop.f32.mrf.mxu0 }
 0x57f   :  { %1433 = vmatmul.msk.f32.gmra.mxu2 %vm364_vm2, %v941_v50 }
 0x586   :  { %v943_v12 = vpop.f32.mrf.mxu0 }
 0x587   :  { %v949_v13 = vpack.c.bf16 %v943_v12, %v941_v50  ;;  %1434 = vmatmul.msk.f32.gmra.mxu2 %vm364_vm2, %v943_v12 }
 0x589   :  { %954 = vmatpush.bf16.msrb.mxu1 %v949_v13  ;;  %v1118_v13 = vpop.f32.mrf.mxu3 }
 0x58d   :  { %955 = vmatpush.bf16.msrb.mxu1 %v948_v16 }
 0x591   :  { %956 = vmatpush.bf16.msrb.mxu1 %v947_v17 }
 0x595   :  { %957 = vmatpush.bf16.msrb.mxu1 %v946_v56 }
 0x598   :  { %1423 = vmatmul.msk.bf16.vlgmr.msrb.gmra.mxu1 %vm79_vm0, %v1474_v33 }
 0x5a8   :  { %1424 = vmatmul.msk.bf16.gmra.mxu1 %vm79_vm0, %v1475_v34 }
 0x5b8   :  { %1425 = vmatmul.msk.bf16.gmra.mxu1 %vm79_vm0, %v1476_v35 }
 0x5c8   :  { %1426 = vmatmul.msk.bf16.gmra.mxu1 %vm79_vm0, %v1477_v36 }
 0x5d2   :  { %v1032_v8 = vpop.f32.mrf.mxu2 }
 0x5d3   :  { %v1098_v25 = vadd.f32 %v1097_v1, %v1032_v8 }
 0x5da   :  { %v1035_v9 = vpop.f32.mrf.mxu2 }
 0x5db   :  { %v1101_v23 = vadd.f32 %v1100_v4, %v1035_v9 }
 0x5e2   :  { %v1038_v10 = vpop.f32.mrf.mxu2 }
 0x5e3   :  { %v1104_v26 = vadd.f32 %v1103_v51, %v1038_v10 }
 0x5ea   :  { %v1041_v3 = vpop.f32.mrf.mxu2 }
 0x5eb   :  { %v1107_v29 = vadd.f32 %v1106_v11, %v1041_v3 }
 0x5f2   :  { %v1044_v15 = vpop.f32.mrf.mxu2 }
 0x5f3   :  { %v1110_v33 = vadd.f32 %v1109_v18, %v1044_v15 }
 0x5fa   :  { %v1047_v20 = vpop.f32.mrf.mxu2 }
 0x5fb   :  { %v1113_v36 = vadd.f32 %v1112_v22, %v1047_v20 }
 0x602   :  { %v1050_v28 = vpop.f32.mrf.mxu2 }
 0x603   :  { %v1116_v42 = vadd.f32 %v1115_v32, %v1050_v28 }
 0x60a   :  { %v1053_v49 = vpop.f32.mrf.mxu2 }
 0x60b   :  { %v1119_v17 = vadd.f32 %v1118_v13, %v1053_v49 }
 0x615   :  { %v959_v5 = vpop.f32.mrf.mxu1 }
 0x616   :  { %1443 = vmatmul.msk.f32.vlgmr.msrb.gmra.mxu0 %vm364_vm2, %v959_v5 }
 0x61d   :  { %v961_v0 = vpop.f32.mrf.mxu1 }
 0x61e   :  { %1444 = vmatmul.msk.f32.gmra.mxu0 %vm364_vm2, %v961_v0 }
 0x625   :  { %v964_v6 = vpop.f32.mrf.mxu1 }
 0x626   :  { %1445 = vmatmul.msk.f32.gmra.mxu0 %vm364_vm2, %v964_v6 }
 0x62d   :  { %v966_v59 = vpop.f32.mrf.mxu1 }
 0x62e   :  { %1446 = vmatmul.msk.f32.gmra.mxu0 %vm364_vm2, %v966_v59 }
 0x635   :  { %v969_v7 = vpop.f32.mrf.mxu1 }
 0x636   :  { %1447 = vmatmul.msk.f32.gmra.mxu0 %vm364_vm2, %v969_v7 }
 0x63d   :  { %v971_v52 = vpop.f32.mrf.mxu1 }
 0x63e   :  { %1448 = vmatmul.msk.f32.gmra.mxu0 %vm364_vm2, %v971_v52 }
 0x645   :  { %v974_v53 = vpop.f32.mrf.mxu1 }
 0x646   :  { %1449 = vmatmul.msk.f32.gmra.mxu0 %vm364_vm2, %v974_v53 }
 0x64d   :  { %v976_v54 = vpop.f32.mrf.mxu1 }
 0x64e   :  { %1450 = vmatmul.msk.f32.gmra.mxu0 %vm364_vm2, %v976_v54 }
 0x693   :  { %v1168_v55 = vpop.f32.mrf.mxu0 }
 0x694   :  { %v1192_v30 = vadd.f32 %v1168_v55, %v1098_v25 }
 0x696   :  { %v1200_v37 = vsel %vm364_vm2, %v1192_v30, 0.0 }
 0x69b   :  { %v1171_v2 = vpop.f32.mrf.mxu0 }
 0x69c   :  { %v1193_v27 = vadd.f32 %v1171_v2, %v1101_v23 }
 0x69e   :  { %v1201_v34 = vsel %vm364_vm2, %v1193_v27, 0.0 }
 0x69f   :  { %v1202_v40 = vadd.f32 %v1201_v34, %v1200_v37 }
 0x6a3   :  { %v1174_v14 = vpop.f32.mrf.mxu0 }
 0x6a4   :  { %v1194_v31 = vadd.f32 %v1174_v14, %v1104_v26 }
 0x6a6   :  { %v1203_v38 = vsel %vm364_vm2, %v1194_v31, 0.0 }
 0x6a7   :  { %v1204_v45 = vadd.f32 %v1203_v38, %v1202_v40 }
 0x6ab   :  { %v1177_v19 = vpop.f32.mrf.mxu0 }
 0x6ac   :  { %v1195_v35 = vadd.f32 %v1177_v19, %v1107_v29 }
 0x6ae   :  { %v1205_v43 = vsel %vm364_vm2, %v1195_v35, 0.0 }
 0x6af   :  { %v1206_v50 = vadd.f32 %v1205_v43, %v1204_v45 }
 0x6b3   :  { %v1180_v21 = vpop.f32.mrf.mxu0 }
 0x6b4   :  { %v1196_v39 = vadd.f32 %v1180_v21, %v1110_v33 }
 0x6b6   :  { %v1207_v46 = vsel %vm364_vm2, %v1196_v39, 0.0 }
 0x6b7   :  { %v1208_v16 = vadd.f32 %v1207_v46, %v1206_v50 }
 0x6bb   :  { %v1183_v24 = vpop.f32.mrf.mxu0 }
 0x6bc   :  { %v1197_v44 = vadd.f32 %v1183_v24, %v1113_v36 }
 0x6be   :  { %v1209_v12 = vsel %vm364_vm2, %v1197_v44, 0.0 }
 0x6bf   :  { %v1210_v57 = vadd.f32 %v1209_v12, %v1208_v16  ;;  %v1464_v12 = vld [vmem:[%s2001_s9] ss:$0 sm:$0xff] }
 0x6c3   :  { %v1186_v41 = vpop.f32.mrf.mxu0 }
 0x6c4   :  { %v1198_v47 = vadd.f32 %v1186_v41, %v1116_v42 }
 0x6c6   :  { %v1211_v56 = vsel %vm364_vm2, %v1198_v47, 0.0 }
 0x6c7   :  { %v1212_v61 = vadd.f32 %v1211_v56, %v1210_v57  ;;  %v1465_v57 = vld [vmem:[%s2002_s10] ss:$0 sm:$0xff] }
 0x6cb   :  { %v1189_v58 = vpop.f32.mrf.mxu0 }
 0x6cc   :  { %v1199_v60 = vadd.f32 %v1189_v58, %v1119_v17 }
 0x6ce   :  { %v1213_v62 = vsel %vm364_vm2, %v1199_v60, 0.0 }
 0x6cf   :  { %v1214_v63 = vadd.f32 %v1213_v62, %v1212_v61 }
 0x6d1   :  { %v1215_v5 = vrot.slane %v1214_v63, 4 }
 0x6d3   :  { %v1216_v0 = vadd.f32 %v1215_v5, %v1214_v63 }
 0x6d5   :  { %v1217_v6 = vrot.slane %v1216_v0, 2 }
 0x6d7   :  { %v1218_v59 = vadd.f32 %v1217_v6, %v1216_v0 }
 0x6d9   :  { %v1219_v7 = vrot.slane %v1218_v59, 1 }
 0x6db   :  { %v1220_v52 = vadd.f32 %v1219_v7, %v1218_v59 }
 0x6dd   :  { %v1221_v53 = vmul.f32 %v1220_v52, %v1649_v48 }
 0x6df   :  { %v1222_v54 = vsub.f32 %v1192_v30, %v1221_v53  ;;  %v1223_v8 = vsub.f32 %v1193_v27, %v1221_v53  ;;  %v1224_v1 = vsub.f32 %v1194_v31, %v1221_v53  ;;  %v1225_v9 = vsub.f32 %v1195_v35, %v1221_v53 }
 0x6e0   :  { %v1226_v4 = vsub.f32 %v1196_v39, %v1221_v53  ;;  %v1227_v2 = vsub.f32 %v1197_v44, %v1221_v53  ;;  %v1228_v18 = vsub.f32 %v1198_v47, %v1221_v53  ;;  %v1229_v22 = vsub.f32 %v1199_v60, %v1221_v53 }
 0x6e1   :  { %v1230_v55 = vmul.f32 %v1222_v54, %v1222_v54  ;;  %v1231_v10 = vmul.f32 %v1223_v8, %v1223_v8  ;;  %v1232_v51 = vmul.f32 %v1224_v1, %v1224_v1  ;;  %v1233_v3 = vmul.f32 %v1225_v9, %v1225_v9 }
 0x6e2   :  { %v1234_v19 = vmul.f32 %v1226_v4, %v1226_v4  ;;  %v1235_v23 = vmul.f32 %v1227_v2, %v1227_v2  ;;  %v1236_v26 = vmul.f32 %v1228_v18, %v1228_v18  ;;  %v1237_v29 = vmul.f32 %v1229_v22, %v1229_v22 }
 0x6e3   :  { %v1238_v11 = vsel %vm364_vm2, %v1230_v55, 0.0  ;;  %v1239_v14 = vsel %vm364_vm2, %v1231_v10, 0.0  ;;  %v1241_v20 = vsel %vm364_vm2, %v1232_v51, 0.0  ;;  %v1243_v24 = vsel %vm364_vm2, %v1233_v3, 0.0 }
 0x6e4   :  { %v1240_v15 = vadd.f32 %v1239_v14, %v1238_v11  ;;  %v1245_v27 = vsel %vm364_vm2, %v1234_v19, 0.0  ;;  %v1247_v30 = vsel %vm364_vm2, %v1235_v23, 0.0  ;;  %v1249_v32 = vsel %vm364_vm2, %v1236_v26, 0.0 }
 0x6e5   :  { %v1251_v34 = vsel %vm364_vm2, %v1237_v29, 0.0 }
 0x6e6   :  { %v1242_v21 = vadd.f32 %v1241_v20, %v1240_v15 }
 0x6e8   :  { %v1244_v25 = vadd.f32 %v1243_v24, %v1242_v21 }
 0x6ea   :  { %v1246_v28 = vadd.f32 %v1245_v27, %v1244_v25 }
 0x6ec   :  { %v1248_v31 = vadd.f32 %v1247_v30, %v1246_v28 }
 0x6ee   :  { %v1250_v33 = vadd.f32 %v1249_v32, %v1248_v31 }
 0x6f0   :  { %v1252_v35 = vadd.f32 %v1251_v34, %v1250_v33 }
 0x6f2   :  { %v1253_v36 = vrot.slane %v1252_v35, 4 }
 0x6f4   :  { %v1254_v37 = vadd.f32 %v1253_v36, %v1252_v35 }
 0x6f6   :  { %v1255_v38 = vrot.slane %v1254_v37, 2 }
 0x6f8   :  { %v1256_v39 = vadd.f32 %v1255_v38, %v1254_v37 }
 0x6fa   :  { %v1257_v40 = vrot.slane %v1256_v39, 1 }
 0x6fc   :  { %v1258_v41 = vadd.f32 %v1257_v40, %v1256_v39 }
 0x6fe   :  { %v1259_v42 = vmul.f32 %v1258_v41, %v1649_v48 }
 0x700   :  { %v1260_v43 = vadd.f32 1e-05, %v1259_v42 }
 0x702   :  { %1472 = vrsqrt.f32 %v1260_v43  ;;  %vm1267_vm12 = vweird.f32 %v1260_v43 }
 0x708   :  { %v1473_v44 = vpop.eup %1472 }
 0x709   :  { %v1262_v45 = vmul.f32 %v1473_v44, %v1260_v43  ;;  %vm1268_vm0 = vweird.f32 %v1473_v44 }
 0x70a   :  { %vm1269_vm13 = vmor %vm1267_vm12, %vm1268_vm0 }
 0x70b   :  { %v1263_v46 = vmul.f32 %v1473_v44, %v1262_v45 }
 0x70d   :  { %v1264_v47 = vmul.f32 0.5, %v1263_v46 }
 0x70f   :  { %v1265_v49 = vsub.f32 1.5, %v1264_v47 }
 0x711   :  { %v1266_v50 = vmul.f32 %v1473_v44, %v1265_v49 }
 0x713   :  { %v1270_v13 = vsel %vm1269_vm13, %v1473_v44, %v1266_v50 }
 0x714   :  { %v1271_v16 = vmul.f32 %v1270_v13, %v1222_v54  ;;  %v1272_v17 = vmul.f32 %v1270_v13, %v1223_v8  ;;  %v1273_v56 = vmul.f32 %v1270_v13, %v1224_v1  ;;  %v1274_v48 = vmul.f32 %v1270_v13, %v1225_v9 }
 0x715   :  { %v1275_v58 = vmul.f32 %v1270_v13, %v1226_v4  ;;  %v1276_v60 = vmul.f32 %v1270_v13, %v1227_v2  ;;  %v1277_v61 = vmul.f32 %v1270_v13, %v1228_v18  ;;  %v1278_v62 = vmul.f32 %v1270_v13, %v1229_v22 }
 0x716   :  { %v1283_v63 = vmul.f32 %v1464_v12, %v1271_v16  ;;  %v1284_v5 = vmul.f32 %v1464_v12, %v1272_v17  ;;  %v1285_v0 = vmul.f32 %v1464_v12, %v1273_v56  ;;  %v1286_v6 = vmul.f32 %v1464_v12, %v1274_v48 }
 0x717   :  { %v1287_v59 = vmul.f32 %v1464_v12, %v1275_v58  ;;  %v1288_v7 = vmul.f32 %v1464_v12, %v1276_v60  ;;  %v1289_v52 = vmul.f32 %v1464_v12, %v1277_v61  ;;  %v1290_v53 = vmul.f32 %v1464_v12, %v1278_v62 }
 0x718   :  { %v1295_v54 = vadd.f32 %v1465_v57, %v1283_v63  ;;  %v1296_v8 = vadd.f32 %v1465_v57, %v1284_v5  ;;  %v1297_v1 = vadd.f32 %v1465_v57, %v1285_v0  ;;  %v1298_v9 = vadd.f32 %v1465_v57, %v1286_v6 }
 0x719   :  { %v1299_v55 = vadd.f32 %v1465_v57, %v1287_v59  ;;  %v1300_v10 = vadd.f32 %v1465_v57, %v1288_v7  ;;  %v1301_v51 = vadd.f32 %v1465_v57, %v1289_v52  ;;  %v1302_v3 = vadd.f32 %v1465_v57, %v1290_v53 }
 0x71a   :  { %vm1303_vm14 = vcmp.gt.f32.partialorder %v1295_v54, 0.0  ;;  %vm1304_vm15 = vcmp.gt.f32.partialorder %v1296_v8, 0.0  ;;  %vm1305_vm1 = vcmp.gt.f32.partialorder %v1297_v1, 0.0  ;;  %vm1306_vm3 = vcmp.gt.f32.partialorder %v1298_v9, 0.0 }
 0x71b   :  { %vm1307_vm4 = vcmp.gt.f32.partialorder %v1299_v55, 0.0  ;;  %v1311_v4 = vmul.f32 0.1, %v1295_v54  ;;  %v1312_v2 = vmul.f32 0.1, %v1296_v8  ;;  %vm1308_vm5 = vcmp.gt.f32.partialorder %v1300_v10, 0.0 }
 0x71c   :  { %v1313_v11 = vmul.f32 0.1, %v1297_v1  ;;  %v1314_v14 = vmul.f32 0.1, %v1298_v9  ;;  %v1315_v15 = vmul.f32 0.1, %v1299_v55 }
 0x71d   :  { %v1316_v18 = vmul.f32 0.1, %v1300_v10  ;;  %v1317_v19 = vmul.f32 0.1, %v1301_v51  ;;  %v1319_v20 = vsel %vm1303_vm14, %v1295_v54, %v1311_v4  ;;  %v1320_v21 = vsel %vm1304_vm15, %v1296_v8, %v1312_v2 }
 0x71e   :  { %vm1309_vm6 = vcmp.gt.f32.partialorder %v1301_v51, 0.0  ;;  %v1318_v22 = vmul.f32 0.1, %v1302_v3  ;;  %v1321_v23 = vsel %vm1305_vm1, %v1297_v1, %v1313_v11  ;;  %v1322_v24 = vsel %vm1306_vm3, %v1298_v9, %v1314_v14  ;;  %1327 = vst.msk [vmem:[%s2003_s11] sm:$0xff] %vm364_vm2, %v1319_v20 }
 0x71f   :  { %vm1310_vm7 = vcmp.gt.f32.partialorder %v1302_v3, 0.0  ;;  %v1323_v25 = vsel %vm1307_vm4, %v1299_v55, %v1315_v15  ;;  %1328 = vst.msk [vmem:[%s2003_s11 + $0x8] sm:$0xff] %vm364_vm2, %v1320_v21  ;;  %v1324_v26 = vsel %vm1308_vm5, %v1300_v10, %v1316_v18  ;;  %v1325_v27 = vsel %vm1309_vm6, %v1301_v51, %v1317_v19 }
 0x720   :  { %1329 = vst.msk [vmem:[%s2003_s11 + $0x10] sm:$0xff] %vm364_vm2, %v1321_v23  ;;  %v1326_v28 = vsel %vm1310_vm7, %v1302_v3, %v1318_v22 }
 0x721   :  { %1330 = vst.msk [vmem:[%s2003_s11 + $0x18] sm:$0xff] %vm364_vm2, %v1322_v24 }
 0x722   :  { %1331 = vst.msk [vmem:[%s2003_s11 + $0x20] sm:$0xff] %vm364_vm2, %v1323_v25 }
 0x723   :  { %1332 = vst.msk [vmem:[%s2003_s11 + $0x28] sm:$0xff] %vm364_vm2, %v1324_v26 }
 0x724   :  { %1333 = vst.msk [vmem:[%s2003_s11 + $0x30] sm:$0xff] %vm364_vm2, %v1325_v27 }
 0x725   :  { %1334 = vst.msk [vmem:[%s2003_s11 + $0x38] sm:$0xff] %vm364_vm2, %v1326_v28 }

</bundles_post_ra>
